<compile_context>
chip_gen: v5e
topology: v5e:2x2
jax: 0.10.0
libtpu: 0.0.40
codegen_flags: <defaults>
</compile_context>

<pallas_src>
from functools import partial

import jax
import jax.numpy as jnp
import numpy as np
from jax import lax
from jax.experimental import pallas as pl
from jax.experimental.pallas import tpu as pltpu


def kv_proj_kernel(k_ref, v_ref, wk_ref, wv_ref, bk_ref, bv_ref, kp_ref, vp_ref):
    """K/V input projections for one (batch, row-tile): (t, D) @ (D, D) + bias."""
    kp_ref[0] = (jnp.dot(k_ref[0], wk_ref[...], preferred_element_type=jnp.float32)
                 + bk_ref[...]).astype(kp_ref.dtype)
    vp_ref[0] = (jnp.dot(v_ref[0], wv_ref[...], preferred_element_type=jnp.float32)
                 + bv_ref[...]).astype(vp_ref.dtype)


def attn_kernel(num_heads, head_dim,
                q_ref, kp_ref, vp_ref, wq_ref, bq_ref, wo_ref, bo_ref, o_ref):
    # Q projection for this query tile; 1/sqrt(head_dim) already folded into wq/bq.
    qp = (jnp.dot(q_ref[0], wq_ref[...], preferred_element_type=jnp.float32)
          + bq_ref[...]).astype(jnp.bfloat16)              # (tq, D)
    kp = kp_ref[0]                                          # (S, D) bf16
    vp = vp_ref[0]                                          # (S, D) bf16

    head_outs = []
    for h in range(num_heads):                              # small static head loop
        lo = h * head_dim
        qh = qp[:, lo:lo + head_dim]                        # (tq, hd)
        kh = kp[:, lo:lo + head_dim]                        # (S,  hd)
        vh = vp[:, lo:lo + head_dim]                        # (S,  hd)

        # scores = qh @ kh^T without materializing a transpose (contract last dims).
        s = lax.dot_general(qh, kh, dimension_numbers=(((1,), (1,)), ((), ())),
                            preferred_element_type=jnp.float32)      # (tq, S) f32
        m = jnp.max(s, axis=-1, keepdims=True)
        e = jnp.exp(s - m)
        p = e * pl.reciprocal(jnp.sum(e, axis=-1, keepdims=True), approx=True)
        head_outs.append(
            jnp.dot(p.astype(jnp.bfloat16), vh,
                    preferred_element_type=jnp.float32).astype(jnp.bfloat16))

    # Lane-axis concat of all heads -> one full-K output projection on the MXU.
    # (For head_dim < 128 this produces sub-128-lane pieces; see header TODO about
    #  grouping heads per step if that ever binds.)
    concat = jnp.concatenate(head_outs, axis=-1)            # (tq, D) bf16
    out = jnp.dot(concat, wo_ref[...], preferred_element_type=jnp.float32) + bo_ref[...]
    o_ref[0] = out.astype(o_ref.dtype)


def _pick_tile(n):
    for t in (256, 128):
        if n % t == 0:
            return t
    return n


def multi_head_self_attention(q, k, v, params, num_heads, q_tile=None,
                              vmem_limit_bytes=None):
    """q, k, v: (B, S, D) float32. params: (D, D) weights (x @ W layout), (1, D) biases."""
    B, S, D = q.shape
    assert D % num_heads == 0
    H = num_heads
    hd = D // H
    scale = 1.0 / float(np.sqrt(hd))

    if q_tile is None:
        q_tile = _pick_tile(S)
    assert S % q_tile == 0 and (q_tile == S or q_tile % 8 == 0)
    nq = S // q_tile
    s_tile = _pick_tile(S)
    ns = S // s_tile

    # bf16 matmul operands (f32 MXU accumulation); biases stay f32.
    qb = q.astype(jnp.bfloat16)
    kb = k.astype(jnp.bfloat16)
    vb = v.astype(jnp.bfloat16)

    # Fold the 1/sqrt(head_dim) scale into the query projection (free on the host).
    wq = (params["wq"] * scale).astype(jnp.bfloat16)
    bq = (params["bq"] * scale).astype(jnp.float32)
    wk = params["wk"].astype(jnp.bfloat16)
    bk = params["bk"].astype(jnp.float32)
    wv = params["wv"].astype(jnp.bfloat16)
    bv = params["bv"].astype(jnp.float32)
    wo = params["wo"].astype(jnp.bfloat16)
    bo = params["bo"].astype(jnp.float32)

    # Constant index maps -> weights / biases are DMA'd once and stay VMEM-resident.
    w_spec = pl.BlockSpec((D, D), lambda b, i: (0, 0))
    b_spec = pl.BlockSpec((1, D), lambda b, i: (0, 0))
    row_spec = pl.BlockSpec((1, s_tile, D), lambda b, i: (b, i, 0))

    # --- Pass 1: K/V projections, computed once (not once per query tile). ---
    kp, vp = pl.pallas_call(
        kv_proj_kernel,
        out_shape=(jax.ShapeDtypeStruct((B, S, D), jnp.bfloat16),
                   jax.ShapeDtypeStruct((B, S, D), jnp.bfloat16)),
        grid_spec=pltpu.PrefetchScalarGridSpec(
            num_scalar_prefetch=0,
            grid=(B, ns),
            in_specs=[row_spec, row_spec, w_spec, w_spec, b_spec, b_spec],
            out_specs=[row_spec, row_spec]),
        compiler_params=pltpu.CompilerParams(
            dimension_semantics=("parallel", "parallel"),
            vmem_limit_bytes=vmem_limit_bytes),
    )(kb, vb, wk, wv, bk, bv)

    # --- Pass 2: Q projection + attention + single D-wide output projection. ---
    q_spec = pl.BlockSpec((1, q_tile, D), lambda b, i: (b, i, 0))
    kv_spec = pl.BlockSpec((1, S, D), lambda b, i: (b, 0, 0))
    out_spec = pl.BlockSpec((1, q_tile, D), lambda b, i: (b, i, 0))

    kernel = partial(attn_kernel, H, hd)

    return pl.pallas_call(
        kernel,
        out_shape=jax.ShapeDtypeStruct((B, S, D), jnp.float32),
        grid_spec=pltpu.PrefetchScalarGridSpec(
            num_scalar_prefetch=0,
            grid=(B, nq),
            in_specs=[q_spec, kv_spec, kv_spec, w_spec, b_spec, w_spec, b_spec],
            out_specs=out_spec),
        compiler_params=pltpu.CompilerParams(
            dimension_semantics=("parallel", "parallel"),
            vmem_limit_bytes=vmem_limit_bytes),
    )(qb, kp, vp, wq, bq, wo, bo)


def reference_mhsa(q, k, v, params, num_heads):
    """Pure-JAX f32 reference matching the PyTorch forward exactly."""
    B, S, D = q.shape
    hd = D // num_heads

    def linear(x, w, b):
        return x @ w + b  # w already (D_in, D_out)

    def split_heads(t):
        return t.reshape(B, S, num_heads, hd).transpose(0, 2, 1, 3)  # (B, H, S, hd)

    qp = split_heads(linear(q, params["wq"], params["bq"]))
    kp = split_heads(linear(k, params["wk"], params["bk"]))
    vp = split_heads(linear(v, params["wv"], params["bv"]))
    scores = jnp.einsum("bhqd,bhkd->bhqk", qp, kp) / jnp.sqrt(jnp.float32(hd))
    attn = jax.nn.softmax(scores, axis=-1)
    out = jnp.einsum("bhqk,bhkd->bhqd", attn, vp)
    out = out.transpose(0, 2, 1, 3).reshape(B, S, D)
    return linear(out, params["wo"], params["bo"])


def init_params(key, d_model):
    """Deterministic nn.Linear-style init: U(-1/sqrt(fan_in), 1/sqrt(fan_in))."""
    bound = 1.0 / np.sqrt(d_model)
    names = ["q", "k", "v", "o"]
    keys = jax.random.split(key, 2 * len(names))
    params = {}
    for i, n in enumerate(names):
        # Stored already transposed: (D_in, D_out).
        params[f"w{n}"] = jax.random.uniform(
            keys[2 * i], (d_model, d_model), jnp.float32, -bound, bound)
        params[f"b{n}"] = jax.random.uniform(
            keys[2 * i + 1], (1, d_model), jnp.float32, -bound, bound)
    return params


if __name__ == "__main__":
    # Small shapes consistent with the module's forward: (batch, seq, d_model).
    # d_model matches the spec (512); num_heads=4 gives head_dim=128 so every
    # per-head lane slice / concat piece is 128-lane aligned (MXU/lane friendly).
    B, S, d_model, num_heads = 2, 16, 512, 4

    root = jax.random.PRNGKey(0)
    kq, kk, kv, kprm = jax.random.split(root, 4)
    query = jax.random.normal(kq, (B, S, d_model), jnp.float32)
    key_t = jax.random.normal(kk, (B, S, d_model), jnp.float32)
    value = jax.random.normal(kv, (B, S, d_model), jnp.float32)
    params = init_params(kprm, d_model)

    out = multi_head_self_attention(query, key_t, value, params, num_heads)
    out = jax.block_until_ready(out)

    ref = reference_mhsa(query, key_t, value, params, num_heads)
    # bf16 matmul operands (f32 accumulation) => relaxed tolerance vs f32 reference.
    np.testing.assert_allclose(np.asarray(out), np.asarray(ref), rtol=3e-2, atol=3e-2)

    print("KERNEL_OK")
</pallas_src>

<mosaic_0001>
module attributes {stable_mosaic.version = 11 : i64} {
  func.func @kv_proj_kernel(%arg0: i32, %arg1: i32, %arg2: memref<1x16x512xbf16, #tpu.memory_space<vmem>>, %arg3: memref<1x16x512xbf16, #tpu.memory_space<vmem>>, %arg4: memref<512x512xbf16, #tpu.memory_space<vmem>>, %arg5: memref<512x512xbf16, #tpu.memory_space<vmem>>, %arg6: memref<1x512xf32, #tpu.memory_space<vmem>>, %arg7: memref<1x512xf32, #tpu.memory_space<vmem>>, %arg8: memref<1x16x512xbf16, #tpu.memory_space<vmem>>, %arg9: memref<1x16x512xbf16, #tpu.memory_space<vmem>>) attributes {dimension_semantics = [#tpu.dimension_semantics<parallel>, #tpu.dimension_semantics<parallel>], iteration_bounds = array<i64: 2, 1>, scalar_prefetch = 0 : i64, scratch_operands = 0 : i64, tpu.core_type = #tpu.core_type<tc>, window_params = [{transform_indices = @transform_0, window_bounds = array<i64: 1, 16, 512>}, {transform_indices = @transform_1, window_bounds = array<i64: 1, 16, 512>}, {pipeline_mode = #tpu.pipeline_mode<synchronous>, transform_indices = @transform_2, window_bounds = array<i64: 512, 512>}, {pipeline_mode = #tpu.pipeline_mode<synchronous>, transform_indices = @transform_3, window_bounds = array<i64: 512, 512>}, {pipeline_mode = #tpu.pipeline_mode<synchronous>, transform_indices = @transform_4, window_bounds = array<i64: 1, 512>}, {pipeline_mode = #tpu.pipeline_mode<synchronous>, transform_indices = @transform_5, window_bounds = array<i64: 1, 512>}, {transform_indices = @transform_6, window_bounds = array<i64: 1, 16, 512>}, {transform_indices = @transform_7, window_bounds = array<i64: 1, 16, 512>}]} {
    %c0 = arith.constant 0 : index
    %c0_0 = arith.constant 0 : index
    %c0_1 = arith.constant 0 : index
    %0 = vector.load %arg2[%c0, %c0_0, %c0_1] : memref<1x16x512xbf16, #tpu.memory_space<vmem>>, vector<1x16x512xbf16>
    %1 = vector.shape_cast %0 : vector<1x16x512xbf16> to vector<16x512xbf16>
    %c0_2 = arith.constant 0 : index
    %c0_3 = arith.constant 0 : index
    %2 = vector.load %arg4[%c0_2, %c0_3] : memref<512x512xbf16, #tpu.memory_space<vmem>>, vector<512x512xbf16>
    %cst = arith.constant dense<0.000000e+00> : vector<16x512xf32>
    %3 = tpu.matmul %1, %2, %cst {dimension_numbers = #tpu.dot_dimension_numbers<[1], [0], [0], [1], [0, 0, 1, 1], [], []>} : vector<16x512xbf16>, vector<512x512xbf16>, vector<16x512xf32> -> vector<16x512xf32>
    %c0_4 = arith.constant 0 : index
    %c0_5 = arith.constant 0 : index
    %4 = vector.load %arg6[%c0_4, %c0_5] : memref<1x512xf32, #tpu.memory_space<vmem>>, vector<1x512xf32>
    %5 = vector.broadcast %4 : vector<1x512xf32> to vector<16x512xf32>
    %6 = arith.addf %3, %5 : vector<16x512xf32>
    %7 = arith.truncf %6 : vector<16x512xf32> to vector<16x512xbf16>
    %c0_6 = arith.constant 0 : index
    %c0_7 = arith.constant 0 : index
    %c0_8 = arith.constant 0 : index
    %8 = vector.load %arg8[%c0_6, %c0_7, %c0_8] : memref<1x16x512xbf16, #tpu.memory_space<vmem>>, vector<1x16x512xbf16>
    %9 = vector.shape_cast %8 : vector<1x16x512xbf16> to vector<16x512xbf16>
    %10 = vector.shape_cast %7 : vector<16x512xbf16> to vector<1x16x512xbf16>
    tpu.vector_store %arg8[%c0_6, %c0_7, %c0_8], %10 {strides = array<i32>} : memref<1x16x512xbf16, #tpu.memory_space<vmem>>, vector<1x16x512xbf16>,
    %c0_9 = arith.constant 0 : index
    %c0_10 = arith.constant 0 : index
    %c0_11 = arith.constant 0 : index
    %11 = vector.load %arg3[%c0_9, %c0_10, %c0_11] : memref<1x16x512xbf16, #tpu.memory_space<vmem>>, vector<1x16x512xbf16>
    %12 = vector.shape_cast %11 : vector<1x16x512xbf16> to vector<16x512xbf16>
    %c0_12 = arith.constant 0 : index
    %c0_13 = arith.constant 0 : index
    %13 = vector.load %arg5[%c0_12, %c0_13] : memref<512x512xbf16, #tpu.memory_space<vmem>>, vector<512x512xbf16>
    %cst_14 = arith.constant dense<0.000000e+00> : vector<16x512xf32>
    %14 = tpu.matmul %12, %13, %cst_14 {dimension_numbers = #tpu.dot_dimension_numbers<[1], [0], [0], [1], [0, 0, 1, 1], [], []>} : vector<16x512xbf16>, vector<512x512xbf16>, vector<16x512xf32> -> vector<16x512xf32>
    %c0_15 = arith.constant 0 : index
    %c0_16 = arith.constant 0 : index
    %15 = vector.load %arg7[%c0_15, %c0_16] : memref<1x512xf32, #tpu.memory_space<vmem>>, vector<1x512xf32>
    %16 = vector.broadcast %15 : vector<1x512xf32> to vector<16x512xf32>
    %17 = arith.addf %14, %16 : vector<16x512xf32>
    %18 = arith.truncf %17 : vector<16x512xf32> to vector<16x512xbf16>
    %c0_17 = arith.constant 0 : index
    %c0_18 = arith.constant 0 : index
    %c0_19 = arith.constant 0 : index
    %19 = vector.load %arg9[%c0_17, %c0_18, %c0_19] : memref<1x16x512xbf16, #tpu.memory_space<vmem>>, vector<1x16x512xbf16>
    %20 = vector.shape_cast %19 : vector<1x16x512xbf16> to vector<16x512xbf16>
    %21 = vector.shape_cast %18 : vector<16x512xbf16> to vector<1x16x512xbf16>
    tpu.vector_store %arg9[%c0_17, %c0_18, %c0_19], %21 {strides = array<i32>} : memref<1x16x512xbf16, #tpu.memory_space<vmem>>, vector<1x16x512xbf16>,
    return
  }
  func.func @transform_0(%arg0: i32, %arg1: i32) -> (i32, i32, i32) {
    %c0_i32 = arith.constant 0 : i32
    %c0_i32_0 = arith.constant 0 : i32
    return %arg0, %arg1, %c0_i32 : i32, i32, i32
  }
  func.func @transform_1(%arg0: i32, %arg1: i32) -> (i32, i32, i32) {
    %c0_i32 = arith.constant 0 : i32
    %c0_i32_0 = arith.constant 0 : i32
    return %arg0, %arg1, %c0_i32 : i32, i32, i32
  }
  func.func @transform_2(%arg0: i32, %arg1: i32) -> (i32, i32) {
    %c0_i32 = arith.constant 0 : i32
    %c0_i32_0 = arith.constant 0 : i32
    %c0_i32_1 = arith.constant 0 : i32
    return %c0_i32, %c0_i32_0 : i32, i32
  }
  func.func @transform_3(%arg0: i32, %arg1: i32) -> (i32, i32) {
    %c0_i32 = arith.constant 0 : i32
    %c0_i32_0 = arith.constant 0 : i32
    %c0_i32_1 = arith.constant 0 : i32
    return %c0_i32, %c0_i32_0 : i32, i32
  }
  func.func @transform_4(%arg0: i32, %arg1: i32) -> (i32, i32) {
    %c0_i32 = arith.constant 0 : i32
    %c0_i32_0 = arith.constant 0 : i32
    %c0_i32_1 = arith.constant 0 : i32
    return %c0_i32, %c0_i32_0 : i32, i32
  }
  func.func @transform_5(%arg0: i32, %arg1: i32) -> (i32, i32) {
    %c0_i32 = arith.constant 0 : i32
    %c0_i32_0 = arith.constant 0 : i32
    %c0_i32_1 = arith.constant 0 : i32
    return %c0_i32, %c0_i32_0 : i32, i32
  }
  func.func @transform_6(%arg0: i32, %arg1: i32) -> (i32, i32, i32) {
    %c0_i32 = arith.constant 0 : i32
    %c0_i32_0 = arith.constant 0 : i32
    return %arg0, %arg1, %c0_i32 : i32, i32, i32
  }
  func.func @transform_7(%arg0: i32, %arg1: i32) -> (i32, i32, i32) {
    %c0_i32 = arith.constant 0 : i32
    %c0_i32_0 = arith.constant 0 : i32
    return %arg0, %arg1, %c0_i32 : i32, i32, i32
  }
}

</mosaic_0001>

<bundles_post_ra>
// kernel: tpu_custom_call.1
= control target key start
LH: loop header
LB: loop body
LE: loop exit
PB: predicated region body
PF: predicated region fallthrough
CT: control target
= control target key end

     0   :  { %s4838_s0 = inlined_call_operand.hbm [shape: bf16[2,16,512], index: 0, kind: input, shape index: {}]   ;;  %s4839_s1 = inlined_call_operand.hbm [shape: bf16[2,16,512], index: 1, kind: input, shape index: {}]   ;;  %s4840_s2 = inlined_call_operand.hbm [shape: bf16[512,512], index: 2, kind: input, shape index: {}]   ;;  %s4841_s3 = inlined_call_operand.hbm [shape: bf16[512,512], index: 3, kind: input, shape index: {}]   ;;  %s4842_s4 = inlined_call_operand.hbm [shape: f32[1,512], index: 4, kind: input, shape index: {}]   ;;  %s4843_s5 = inlined_call_operand.vmem [shape: f32[1,512], index: 5, kind: input, shape index: {}]   ;;  %s4844_s6 = inlined_call_operand.hbm [shape: bf16[2,16,512], index: 6, kind: output, shape index: {0}]   ;;  %s4845_s7 = inlined_call_operand.hbm [shape: bf16[2,16,512], index: 7, kind: output, shape index: {1}]  }
   0x1   :  { %4853 = sst [smem:[#allocation24_spill]] %s4840_s2 }
   0x2   :  { %4854 = sst [smem:[#allocation25_spill]] %s4841_s3 }
   0x3   :  { %4855 = sst [smem:[#allocation26_spill]] %s4842_s4 }
   0x4   :  { %13 = vsyncpa [#allocation3], 0 }
   0x5   :  { %15 = vsyncpa [#allocation3 + $0x1], 0 }
   0x6   :  { %16 = vsyncpa [#allocation6], 0 }
   0x7   :  { %18 = vsyncpa [#allocation6 + $0x1], 0 }
   0x8   :  { %19 = vsyncpa [#allocation9], 0 }
   0x9   :  { %20 = vsyncpa [#allocation4], 0 }
   0xa   :  { %22 = vsyncpa [#allocation4 + $0x1], 0 }
   0xb   :  { %23 = vsyncpa [#allocation13], 0 }
   0xc   :  { %25 = vsyncpa [#allocation13 + $0x1], 0  ;;  %s4503_s24 = smov 0   ;;  %s4505_s25 = smov 0  }
   0xd   :  { %s4507_s26 = smov 0   ;;  %s4509_s27 = smov 0  }
   0xe   :  { %s4511_s28 = smov 0   ;;  %s4513_s29 = smov 0  }
   0xf LB: > { %4856 = sst [smem:[#allocation20_spill]] %s4450_s28  ;;  %s4534_s30 = sadd.s32 4294967295, %s4454_s29   ;;  %s4454_s29 = sphi %s4513_s29, %s31_s29   ;;  %s4450_s28 = sphi %s4511_s28, %s4874_s28   ;;  %s4446_s27 = sphi %s4509_s27, %s4873_s27   ;;  %s4442_s26 = sphi %s4507_s26, %s4877_s26   ;;  %s4438_s25 = sphi %s4505_s25, %s4876_s25   ;;  %s4434_s24 = sphi %s4503_s24, %s4875_s24  }
  0x10   : > { %s2719_s8 = sadd.s32 4294967294, %s4454_s29   ;;  %p65_p0 = scmp.ne.s32.totalorder %s4438_s25, %s4434_s24 }
  0x11   : > { %p66_p1 = scmp.eq.s32.totalorder %s4534_s30, 0  ;;  %p203_p2 = scmp.eq.s32.totalorder %s4534_s30, 1 }
  0x12   : > { %p209_p3 = scmp.eq.s32.totalorder %s2719_s8, 1  ;;  %p2720_p5 = scmp.ge.s32.totalorder %s4454_s29, 1 }
  0x13   : > { %p4543_p4 = por %p66_p1, %p65_p0  ;;  %p244_p7 = scmp.lt.s32.totalorder %s4454_s29, 3 }
  0x14   : > { %p4548_p6 = por %p209_p3, %p65_p0  ;;  %s4860_s2 = sld [smem:[#allocation24_spill]] }
  0x15   : > { %p4556_p8 = pnand %p2720_p5, %p244_p7  ;;  %s4456_s15 = smov [#allocation7]  }
  0x16   : > { %s4858_s10 = scalar_select %p4548_p6, 1, 0 }
  0x17   : > { %p4091_p9 = pneg %p4556_p8  ;;  %s257_s16 = sshll.u32 %s4456_s15, 4  ;;  %s258_s16 = int_to_ptr.vmem [resolvable:$true] %s257_s16 }
  0x18   : > { %4859 = sst [smem:[#allocation21_spill]] %s4858_s10  ;;  %p2724_p11 = scmp.ge.s32.totalorder %s4454_s29, 2 }
  0x19   : > { %p4564_p10 = pnand %p4091_p9, %p66_p1  ;;  %s4863_s3 = sld [smem:[#allocation25_spill]] }
  0x1a   : > { %s255_s13 = sshll.u32 %s4860_s2, 4  ;;  %s4846_s21 = smov 256   ;;  %s256_s13 = int_to_ptr.hbm [resolvable:$true] %s255_s13 }
  0x1b   : > { %s4848_s22 = smov 16   ;;  %s4459_s23 = smov [#allocation8]  }
  0x1c   : > { %4094 = dma.hbm_to_vmem [thread:$0]  (!%p4564_p10), %s256_s13, 16384, %s258_s16, [#allocation6], %s4846_s21, %s4846_s21, %s4848_s22  }
  0x1d   : > { %s271_s8 = sshll.u32 %s4459_s23, 4  ;;  %s4864_s4 = sld [smem:[#allocation26_spill]]  ;;  %s272_s8 = int_to_ptr.vmem [resolvable:$true] %s271_s8 }
  0x1e   : > { %s4460_s18 = smov [#allocation10]   ;;  %s43_s13 = sadd.s32 1, %s4450_s28 }
  0x1f   : > { %s269_s20 = sshll.u32 %s4863_s3, 4  ;;  %s286_s19 = sshll.u32 %s4460_s18, 4  ;;  %s270_s20 = int_to_ptr.hbm [resolvable:$true] %s269_s20  ;;  %s287_s19 = int_to_ptr.vmem [resolvable:$true] %s286_s19 }
  0x20   : > { %4097 = dma.hbm_to_vmem [thread:$0]  (!%p4564_p10), %s270_s20, 16384, %s272_s8, [#allocation9], %s4846_s21, %s4846_s21, %s4848_s22  }
  0x21   : > { %p45_p12 = scmp.ge.s32.totalorder %s43_s13, 2  ;;  %s52_s16 = sadd.s32 1, %s4442_s26 }
  0x22   : > { %p59_p13 = scmp.ne.s32.totalorder %s4442_s26, %s4438_s25  ;;  %p60_p0 = scmp.eq.s32.totalorder %s4454_s29, 0 }
  0x23   : > { %s284_s15 = sshll.u32 %s4864_s4, 4  ;;  %s4879_s13 = smov (%p45_p12, %s43_s13), 0  ;;  %s285_s15 = int_to_ptr.hbm [resolvable:$true] %s284_s15 }
  0x24   : > { %4100 = dma.hbm_to_vmem [thread:$0]  (!%p4564_p10), %s285_s15, 64, %s287_s19, [#allocation9]  }
  0x25   : > { %4865 = sst [smem:[#allocation22_spill]] %s4879_s13  ;;  %p4594_p3 = por %p60_p0, %p59_p13 }
  0x26   : > { %p4600_p5 = por %p203_p2, %p59_p13  ;;  %s47_s17 = ssub.s32 %s4450_s28, %s4879_s13 }
  0x27   : > { %p4118_p7 = scmp.lt.s32.totalorder %s4454_s29, 2  ;;  %p50_p9 = scmp.eq.s32.totalorder %s47_s17, 0 }
  0x28   : > { %s300_s8 = sand.u32 1, %s4442_s26   ;;  %s3803_s15 = sshll.u32 %s4450_s28, 5 }
  0x29   : > { %s2725_s11 = sshll.u32 %s300_s8, 5  ;;  %s312_s21 = scalar_lea.hbm %s4838_s0, %s3803_s15 }
  0x2a   : > { %s4609_s12 = scalar_select %p50_p9, %s4442_s26, %s52_s16  }
  0x2b   : > { %s304_s22 = scalar_lea.vmem [#allocation2], %s2725_s11  ;;  %s313_s3 = sshll.u32 %s312_s21, 4  ;;  %s314_s3 = int_to_ptr.hbm [resolvable:$true] %s313_s3 }
  0x2c   : > { %4868 = sst [smem:[#allocation23_spill]] %s4609_s12  ;;  %s315_s2 = sshll.u32 %s304_s22, 4  ;;  %s316_s2 = int_to_ptr.vmem [resolvable:$true] %s315_s2 }
  0x2d   : > { %p4102_p2 = pnand %p4118_p7, %p4594_p3  ;;  %s337_s17 = scalar_lea.hbm %s4839_s1, %s3803_s15 }
  0x2e   : > { %s338_s10 = sshll.u32 %s337_s17, 4  ;;  %s301_s16 = scalar_lea.sflag [#allocation3], %s300_s8  ;;  %s339_s10 = int_to_ptr.hbm [resolvable:$true] %s338_s10 }
  0x2f   : > { %s4869_s12 = smov 16   ;;  %s4870_s28 = smov 256  }
  0x30   : > { %4104 = dma.hbm_to_vmem [thread:$0]  (!%p4102_p2), %s314_s3, 512, %s316_s2, %s301_s16, %s4870_s28, %s4870_s28, %s4869_s12  }
  0x31   : > { %s329_s18 = scalar_lea.vmem [#allocation5], %s2725_s11  ;;  %s325_s22 = sand.u32 1, %s4454_s29  }
  0x32   : > { %s340_s19 = sshll.u32 %s329_s18, 4  ;;  %s326_s21 = scalar_lea.sflag [#allocation6], %s325_s22  ;;  %s341_s19 = int_to_ptr.vmem [resolvable:$true] %s340_s19 }
  0x33   : > { %4107 = dma.hbm_to_vmem [thread:$0]  (!%p4102_p2), %s339_s10, 512, %s341_s19, %s326_s21, %s4870_s28, %s4870_s28, %s4869_s12  }
  0x34   : > { %352 = sbr.rel (%p4556_p8) target bundleno = 474 (0x1da), region = 44  ;;  %s4630_s4 = sand.u32 (!%p4556_p8), 1, %s4438_s25  }
  0x35   : > { %s4633_s2 = sshll.u32 (!%p4556_p8), %s4630_s4, 5  ;;  %s355_s3 = scalar_lea.sflag (!%p4556_p8), [#allocation3], %s4630_s4 }
  0x36   : > { %s4637_s13 = scalar_lea.vmem (!%p4556_p8), [#allocation2], %s4633_s2 }
  0x39   : > { %4409 = dma.done.wait (%p4543_p4), %s355_s3, 512  }
  0x3a   : > { %4411 = vsyncadd (%p4543_p4), %s355_s3, 4294966784  ;;  %s364_s28 = sand.u32 1, %s4534_s30   ;;  %s4645_s14 = scalar_lea.vmem [#allocation5], %s4633_s2 }
  0x3b   : > { %s365_s10 = scalar_lea.sflag [#allocation6], %s364_s28 }
  0x3c   : > { %4413 = dma.done.wait (%p4543_p4), %s365_s10, 512  }
  0x3d   : > { %4415 = vsyncadd (%p4543_p4), %s365_s10, 4294966784 }
  0x3e   : > { %4417 = dma.done.wait (%p66_p1), [#allocation6], 16384  }
  0x3f   : > { %4419 = vsyncadd (%p66_p1), [#allocation6], 4294950912 }
  0x40   : > { %4421 = dma.done.wait (%p66_p1), [#allocation9], 16448  }
  0x41   : > { %4423 = vsyncadd (%p66_p1), [#allocation9], 4294950848  ;;  %v2869_v0 = vld [vmem:[#allocation7 + $0xe0] sm:$0xf]  ;;  %v3839_v1 = vld [vmem:[#allocation7 + $0xec] sm:$0xf0] }
  0x42   : > { %v2997_v2 = vld [vmem:[#allocation7 + $0x1e0] sm:$0xf]  ;;  %v2870_v3 = vor.u32 %v3839_v1, %v2869_v0  ;;  %v3871_v4 = vld [vmem:[#allocation7 + $0x1ec] sm:$0xf0]  ;;  %s4747_s30 = scalar_lea.vmem [#allocation11], %s4633_s2  ;;  %s4069_s9 = sshll.u32 %s4446_s27, 5 }
  0x43   : > { %v3125_v5 = vld [vmem:[#allocation7 + $0x2e0] sm:$0xf]  ;;  %v3903_v6 = vld [vmem:[#allocation7 + $0x2ec] sm:$0xf0]  ;;  %v2998_v7 = vor.u32 %v3871_v4, %v2997_v2  ;;  %s2517_s11 = scalar_lea.hbm %s4844_s6, %s4069_s9  ;;  %s2518_s12 = sshll.u32 %s4747_s30, 4  ;;  %s2519_s12 = int_to_ptr.vmem [resolvable:$true] %s2518_s12 }
  0x44   : > { %v3126_v8 = vor.u32 %v3903_v6, %v3125_v5  ;;  %v3253_v9 = vld [vmem:[#allocation7 + $0x3e0] sm:$0xf]  ;;  %v3935_v10 = vld [vmem:[#allocation7 + $0x3ec] sm:$0xf0]  ;;  %1231 = vmatpush.bf16.msra.mxu0 %v2870_v3  ;;  %s2520_s15 = sshll.u32 %s2517_s11, 4  ;;  %s2498_s17 = scalar_lea.sflag [#allocation4], %s4630_s4  ;;  %s2521_s15 = int_to_ptr.hbm [resolvable:$true] %s2520_s15 }
  0x45   : > { %v2853_v11 = vld [vmem:[#allocation7 + $0xc0] sm:$0xf]  ;;  %v3254_v12 = vor.u32 %v3935_v10, %v3253_v9  ;;  %v3835_v13 = vld [vmem:[#allocation7 + $0xcc] sm:$0xf0]  ;;  %1245 = vmatpush.bf16.msra.mxu1 %v2998_v7  ;;  %s4342_s16 = sshra.s32 %s2521_s15, 4  ;;  %s4348_s21 = scalar_lea.hbm %s4844_s6, 64  ;;  %s4343_s16 = int_to_ptr.hbm [resolvable:$true] %s4342_s16 }
  0x46   : > { %v2981_v14 = vld [vmem:[#allocation7 + $0x1c0] sm:$0xf]  ;;  %v3867_v15 = vld [vmem:[#allocation7 + $0x1cc] sm:$0xf0]  ;;  %1259 = vmatpush.bf16.msra.mxu2 %v3126_v8  ;;  %v2854_v16 = vor.u32 %v3835_v13, %v2853_v11  ;;  %s4344_s18 = scalar_lea.hbm %s4343_s16, 32  ;;  %p4349_p10 = scmp.lt.s32.totalorder %s4343_s16, %s4844_s6 }
  0x47   : > { %v2982_v17 = vor.u32 %v3867_v15, %v2981_v14  ;;  %v3109_v18 = vld [vmem:[#allocation7 + $0x2c0] sm:$0xf]  ;;  %v3899_v19 = vld [vmem:[#allocation7 + $0x2cc] sm:$0xf0]  ;;  %1273 = vmatpush.bf16.msra.mxu3 %v3254_v12  ;;  %p4345_p1 = scmp.ne.s32.totalorder %s4343_s16, %s4344_s18  ;;  %p4350_p12 = scmp.lt.s32.totalorder %s4348_s21, %s4344_s18 }
  0x48   : > { %v3237_v20 = vld [vmem:[#allocation7 + $0x3c0] sm:$0xf]  ;;  %v3110_v21 = vor.u32 %v3899_v19, %v3109_v18  ;;  %v3931_v22 = vld [vmem:[#allocation7 + $0x3cc] sm:$0xf0]  ;;  %1232 = vmatpush.bf16.msra.mxu0 %v2854_v16 }
  0x49   : > { %v2837_v23 = vld [vmem:[#allocation7 + $0xa0] sm:$0xf]  ;;  %v3831_v24 = vld [vmem:[#allocation7 + $0xac] sm:$0xf0]  ;;  %v3238_v25 = vor.u32 %v3931_v22, %v3237_v20  ;;  %1246 = vmatpush.bf16.msra.mxu1 %v2982_v17  ;;  %p4346_p4 = pnand %p4345_p1, %p4600_p5  ;;  %p4351_p13 = por %p4350_p12, %p4349_p10 }
  0x4a   : > { %v2965_v26 = vld [vmem:[#allocation7 + $0x1a0] sm:$0xf]  ;;  %v3863_v27 = vld [vmem:[#allocation7 + $0x1ac] sm:$0xf0]  ;;  %v2838_v29 = vor.u32 %v3831_v24, %v2837_v23  ;;  %1260 = vmatpush.bf16.msra.mxu2 %v3110_v21 }
  0x4b   : > { %v3093_v28 = vld [vmem:[#allocation7 + $0x2a0] sm:$0xf]  ;;  %v3895_v30 = vld [vmem:[#allocation7 + $0x2ac] sm:$0xf0]  ;;  %v2966_v33 = vor.u32 %v3863_v27, %v2965_v26  ;;  %1274 = vmatpush.bf16.msra.mxu3 %v3238_v25  ;;  %p4347_p8 = pneg %p4346_p4 }
  0x4c   : > { %v3221_v31 = vld [vmem:[#allocation7 + $0x3a0] sm:$0xf]  ;;  %v3927_v32 = vld [vmem:[#allocation7 + $0x3ac] sm:$0xf0]  ;;  %v3094_v34 = vor.u32 %v3895_v30, %v3093_v28  ;;  %1233 = vmatpush.bf16.msra.mxu0 %v2838_v29  ;;  %v3837_v28 = vld [vmem:[#allocation7 + $0xe4] sm:$0xf] }
  0x4d   : > { %v2821_v35 = vld [vmem:[#allocation7 + $0x80] sm:$0xf]  ;;  %v3827_v36 = vld [vmem:[#allocation7 + $0x8c] sm:$0xf0]  ;;  %v3222_v38 = vor.u32 %v3927_v32, %v3221_v31  ;;  %1247 = vmatpush.bf16.msra.mxu1 %v2966_v33  ;;  %v2871_v29 = vld [vmem:[#allocation7 + $0xf0] sm:$0xf0]  ;;  %p4352_p0 = pnand %p4351_p13, %p4347_p8 }
  0x4e   : > { %v2949_v37 = vld [vmem:[#allocation7 + $0x180] sm:$0xf]  ;;  %v3859_v39 = vld [vmem:[#allocation7 + $0x18c] sm:$0xf0]  ;;  %v2822_v44 = vor.u32 %v3827_v36, %v2821_v35  ;;  %1261 = vmatpush.bf16.msra.mxu2 %v3094_v34  ;;  %v3869_v30 = vld [vmem:[#allocation7 + $0x1e4] sm:$0xf] }
  0x4f   : > { %v3077_v40 = vld [vmem:[#allocation7 + $0x280] sm:$0xf]  ;;  %v3891_v41 = vld [vmem:[#allocation7 + $0x28c] sm:$0xf0]  ;;  %v2950_v45 = vor.u32 %v3859_v39, %v2949_v37  ;;  %1275 = vmatpush.bf16.msra.mxu3 %v3222_v38  ;;  %v2999_v32 = vld [vmem:[#allocation7 + $0x1f0] sm:$0xf0] }
  0x50   : > { %v3205_v42 = vld [vmem:[#allocation7 + $0x380] sm:$0xf]  ;;  %v3923_v43 = vld [vmem:[#allocation7 + $0x38c] sm:$0xf0]  ;;  %v3078_v46 = vor.u32 %v3891_v41, %v3077_v40  ;;  %1234 = vmatpush.bf16.msra.mxu0 %v2822_v44  ;;  %v3901_v33 = vld [vmem:[#allocation7 + $0x2e4] sm:$0xf]  ;;  %v2874_v40 = vor.u32 %v3837_v28, %v2871_v29 }
  0x51   : > { %v2805_v47 = vld [vmem:[#allocation7 + $0x60] sm:$0xf]  ;;  %v3823_v48 = vld [vmem:[#allocation7 + $0x6c] sm:$0xf0]  ;;  %v3206_v50 = vor.u32 %v3923_v43, %v3205_v42  ;;  %1248 = vmatpush.bf16.msra.mxu1 %v2950_v45  ;;  %v3127_v34 = vld [vmem:[#allocation7 + $0x2f0] sm:$0xf0]  ;;  %v3002_v43 = vor.u32 %v3869_v30, %v2999_v32 }
  0x52   : > { %v2933_v49 = vld [vmem:[#allocation7 + $0x160] sm:$0xf]  ;;  %v3855_v51 = vld [vmem:[#allocation7 + $0x16c] sm:$0xf0]  ;;  %v2806_v56 = vor.u32 %v3823_v48, %v2805_v47  ;;  %1262 = vmatpush.bf16.msra.mxu2 %v3078_v46  ;;  %v3933_v37 = vld [vmem:[#allocation7 + $0x3e4] sm:$0xf]  ;;  %v3130_v44 = vor.u32 %v3901_v33, %v3127_v34 }
  0x53   : > { %v3061_v52 = vld [vmem:[#allocation7 + $0x260] sm:$0xf]  ;;  %v3887_v53 = vld [vmem:[#allocation7 + $0x26c] sm:$0xf0]  ;;  %v2934_v57 = vor.u32 %v3855_v51, %v2933_v49  ;;  %1276 = vmatpush.bf16.msra.mxu3 %v3206_v50  ;;  %v3255_v38 = vld [vmem:[#allocation7 + $0x3f0] sm:$0xf0] }
  0x54   : > { %v3189_v54 = vld [vmem:[#allocation7 + $0x360] sm:$0xf]  ;;  %v3919_v55 = vld [vmem:[#allocation7 + $0x36c] sm:$0xf0]  ;;  %v3062_v58 = vor.u32 %v3887_v53, %v3061_v52  ;;  %1235 = vmatpush.bf16.msra.mxu0 %v2806_v56  ;;  %v3833_v41 = vld [vmem:[#allocation7 + $0xc4] sm:$0xf]  ;;  %v3258_v48 = vor.u32 %v3933_v37, %v3255_v38 }
  0x55   : > { %v2789_v59 = vld [vmem:[#allocation7 + $0x40] sm:$0xf]  ;;  %v3819_v60 = vld [vmem:[#allocation7 + $0x4c] sm:$0xf0]  ;;  %v3190_v62 = vor.u32 %v3919_v55, %v3189_v54  ;;  %1249 = vmatpush.bf16.msra.mxu1 %v2934_v57  ;;  %v2855_v42 = vld [vmem:[#allocation7 + $0xd0] sm:$0xf0] }
  0x56   : > { %v2917_v61 = vld [vmem:[#allocation7 + $0x140] sm:$0xf]  ;;  %v3851_v63 = vld [vmem:[#allocation7 + $0x14c] sm:$0xf0]  ;;  %v2790_v4 = vor.u32 %v3819_v60, %v2789_v59  ;;  %1263 = vmatpush.bf16.msra.mxu2 %v3062_v58  ;;  %v3865_v45 = vld [vmem:[#allocation7 + $0x1c4] sm:$0xf]  ;;  %v2858_v55 = vor.u32 %v3833_v41, %v2855_v42 }
  0x57   : > { %v3045_v0 = vld [vmem:[#allocation7 + $0x240] sm:$0xf]  ;;  %v3883_v1 = vld [vmem:[#allocation7 + $0x24c] sm:$0xf0]  ;;  %v2918_v5 = vor.u32 %v3851_v63, %v2917_v61  ;;  %1277 = vmatpush.bf16.msra.mxu3 %v3190_v62  ;;  %v2983_v46 = vld [vmem:[#allocation7 + $0x1d0] sm:$0xf0] }
  0x58   : > { %v3173_v2 = vld [vmem:[#allocation7 + $0x340] sm:$0xf]  ;;  %v3915_v3 = vld [vmem:[#allocation7 + $0x34c] sm:$0xf0]  ;;  %v3046_v6 = vor.u32 %v3883_v1, %v3045_v0  ;;  %1236 = vmatpush.bf16.msra.mxu0 %v2790_v4  ;;  %v3897_v47 = vld [vmem:[#allocation7 + $0x2c4] sm:$0xf]  ;;  %v2986_v60 = vor.u32 %v3865_v45, %v2983_v46 }
  0x59   : > { %v2773_v7 = vld [vmem:[#allocation7 + $0x20] sm:$0xf]  ;;  %v3815_v8 = vld [vmem:[#allocation7 + $0x2c] sm:$0xf0]  ;;  %v3174_v10 = vor.u32 %v3915_v3, %v3173_v2  ;;  %1250 = vmatpush.bf16.msra.mxu1 %v2918_v5  ;;  %v3111_v49 = vld [vmem:[#allocation7 + $0x2d0] sm:$0xf0] }
  0x5a   : > { %v2901_v9 = vld [vmem:[#allocation7 + $0x120] sm:$0xf]  ;;  %v3847_v11 = vld [vmem:[#allocation7 + $0x12c] sm:$0xf0]  ;;  %v2774_v16 = vor.u32 %v3815_v8, %v2773_v7  ;;  %1264 = vmatpush.bf16.msra.mxu2 %v3046_v6  ;;  %v3929_v50 = vld [vmem:[#allocation7 + $0x3c4] sm:$0xf]  ;;  %v3114_v61 = vor.u32 %v3897_v47, %v3111_v49 }
  0x5b   : > { %v3029_v12 = vld [vmem:[#allocation7 + $0x220] sm:$0xf]  ;;  %v3879_v13 = vld [vmem:[#allocation7 + $0x22c] sm:$0xf0]  ;;  %v2902_v19 = vor.u32 %v3847_v11, %v2901_v9  ;;  %1278 = vmatpush.bf16.msra.mxu3 %v3174_v10  ;;  %v3239_v51 = vld [vmem:[#allocation7 + $0x3d0] sm:$0xf0] }
  0x5c   : > { %v3157_v14 = vld [vmem:[#allocation7 + $0x320] sm:$0xf]  ;;  %v3911_v15 = vld [vmem:[#allocation7 + $0x32c] sm:$0xf0]  ;;  %v3030_v20 = vor.u32 %v3879_v13, %v3029_v12  ;;  %1237 = vmatpush.bf16.msra.mxu0 %v2774_v16  ;;  %v3829_v52 = vld [vmem:[#allocation7 + $0xa4] sm:$0xf]  ;;  %v3242_v1 = vor.u32 %v3929_v50, %v3239_v51 }
  0x5d   : > { %v2757_v17 = vld [vmem:[#allocation7] sm:$0xf]  ;;  %v3811_v18 = vld [vmem:[#allocation7 + $0xc] sm:$0xf0]  ;;  %v3158_v24 = vor.u32 %v3911_v15, %v3157_v14  ;;  %1251 = vmatpush.bf16.msra.mxu1 %v2902_v19  ;;  %v2749_v53 = vld [vmem:[%s4637_s13 + $0x8] sm:$0xf] }
  0x5e   : > { %v2885_v21 = vld [vmem:[#allocation7 + $0x100] sm:$0xf]  ;;  %v3843_v22 = vld [vmem:[#allocation7 + $0x10c] sm:$0xf0]  ;;  %v2758_v31 = vor.u32 %v3811_v18, %v2757_v17  ;;  %1265 = vmatpush.bf16.msra.mxu2 %v3030_v20  ;;  %v3808_v54 = vld [vmem:[%s4637_s13 + $0x14] sm:$0xf0] }
  0x5f   : > { %v3013_v23 = vld [vmem:[#allocation7 + $0x200] sm:$0xf]  ;;  %v3875_v25 = vld [vmem:[#allocation7 + $0x20c] sm:$0xf0]  ;;  %v2886_v35 = vor.u32 %v3843_v22, %v2885_v21  ;;  %1279 = vmatpush.bf16.msra.mxu3 %v3158_v24  ;;  %v2839_v56 = vld [vmem:[#allocation7 + $0xb0] sm:$0xf0]  ;;  %v4661_v59 = vor.u32 %v3808_v54, %v2749_v53 }
  0x60   : > { %v3141_v26 = vld [vmem:[#allocation7 + $0x300] sm:$0xf]  ;;  %v3907_v27 = vld [vmem:[#allocation7 + $0x30c] sm:$0xf0]  ;;  %v3014_v36 = vor.u32 %v3875_v25, %v3013_v23  ;;  %1238 = vmatpush.bf16.msra.mxu0 %v2758_v31  ;;  %v3861_v57 = vld [vmem:[#allocation7 + $0x1a4] sm:$0xf]  ;;  %v2842_v9 = vor.u32 %v3829_v52, %v2839_v56 }
  0x61   : > { %v3142_v39 = vor.u32 %v3907_v27, %v3141_v26  ;;  %1252 = vmatpush.bf16.msra.mxu1 %v2886_v35  ;;  %v2967_v58 = vld [vmem:[#allocation7 + $0x1b0] sm:$0xf0]  ;;  %v3893_v62 = vld [vmem:[#allocation7 + $0x2a4] sm:$0xf]  ;;  %v2741_v3 = vld [vmem:[%s4637_s13] sm:$0xf] }
  0x62   : > { %1266 = vmatpush.bf16.msra.mxu2 %v3014_v36  ;;  %v3095_v63 = vld [vmem:[#allocation7 + $0x2b0] sm:$0xf0]  ;;  %v3925_v0 = vld [vmem:[#allocation7 + $0x3a4] sm:$0xf]  ;;  %v3807_v4 = vld [vmem:[%s4637_s13 + $0xc] sm:$0xf0]  ;;  %v2970_v12 = vor.u32 %v3861_v57, %v2967_v58 }
  0x63   : > { %1280 = vmatpush.bf16.msra.mxu3 %v3142_v39  ;;  %v3223_v2 = vld [vmem:[#allocation7 + $0x3b0] sm:$0xf0]  ;;  %v4666_v5 = vor.u32 %v3807_v4, %v2741_v3  ;;  %v3806_v6 = vld [vmem:[%s4637_s13 + $0xc] sm:$0xf]  ;;  %v2751_v7 = vld [vmem:[%s4637_s13 + $0x18] sm:$0xf0]  ;;  %v3098_v13 = vor.u32 %v3893_v62, %v3095_v63 }
  0x64   : > { %1287 = vmatpush.bf16.msrb.mxu0 %v2874_v40  ;;  %v3805_v8 = vld [vmem:[%s4637_s13 + $0x4] sm:$0xf]  ;;  %v4671_v10 = vor.u32 %v3806_v6, %v2751_v7  ;;  %v2743_v11 = vld [vmem:[%s4637_s13 + $0x10] sm:$0xf0]  ;;  %v3226_v18 = vor.u32 %v3925_v0, %v3223_v2 }
  0x65   : > { %1301 = vmatpush.bf16.msrb.mxu1 %v3002_v43  ;;  %1267 = vmatmul.bf16.vlgmr.msra.gmra.mxu2 %v4661_v59  ;;  %v3825_v14 = vld [vmem:[#allocation7 + $0x84] sm:$0xf]  ;;  %v2823_v15 = vld [vmem:[#allocation7 + $0x90] sm:$0xf0]  ;;  %v4674_v17 = vor.u32 %v3805_v8, %v2743_v11  ;;  %v2877_v11 = vld [vmem:[#allocation7 + $0xe8] sm:$0xf] }
  0x66   : > { %1315 = vmatpush.bf16.msrb.mxu2 %v3130_v44  ;;  %v3857_v16 = vld [vmem:[#allocation7 + $0x184] sm:$0xf]  ;;  %v2951_v19 = vld [vmem:[#allocation7 + $0x190] sm:$0xf0]  ;;  %1239 = vmatmul.bf16.vlgmr.msra.gmra.mxu0 %v4666_v5  ;;  %v2826_v24 = vor.u32 %v3825_v14, %v2823_v15  ;;  %v3872_v15 = vld [vmem:[#allocation7 + $0x1f4] sm:$0xf0] }
  0x67   : > { %1329 = vmatpush.bf16.msrb.mxu3 %v3258_v48  ;;  %v3889_v20 = vld [vmem:[#allocation7 + $0x284] sm:$0xf]  ;;  %v3079_v21 = vld [vmem:[#allocation7 + $0x290] sm:$0xf0]  ;;  %1253 = vmatmul.bf16.vlgmr.msra.gmra.mxu1 %v4674_v17  ;;  %v2954_v25 = vor.u32 %v3857_v16, %v2951_v19  ;;  %v3133_v16 = vld [vmem:[#allocation7 + $0x2e8] sm:$0xf] }
  0x68   : > { %1288 = vmatpush.bf16.msrb.mxu0 %v2858_v55  ;;  %v3921_v22 = vld [vmem:[#allocation7 + $0x384] sm:$0xf]  ;;  %v3207_v23 = vld [vmem:[#allocation7 + $0x390] sm:$0xf0]  ;;  %1281 = vmatmul.bf16.vlgmr.msra.gmra.mxu3 %v4671_v10  ;;  %v3082_v26 = vor.u32 %v3889_v20, %v3079_v21  ;;  %v3261_v21 = vld [vmem:[#allocation7 + $0x3e8] sm:$0xf] }
  0x69   : > { %1302 = vmatpush.bf16.msrb.mxu1 %v2986_v60  ;;  %v3821_v27 = vld [vmem:[#allocation7 + $0x64] sm:$0xf]  ;;  %v2807_v28 = vld [vmem:[#allocation7 + $0x70] sm:$0xf0]  ;;  %v3210_v30 = vor.u32 %v3921_v22, %v3207_v23  ;;  %v3936_v22 = vld [vmem:[#allocation7 + $0x3f4] sm:$0xf0] }
  0x6a   : > { %1316 = vmatpush.bf16.msrb.mxu2 %v3114_v61  ;;  %v3853_v29 = vld [vmem:[#allocation7 + $0x164] sm:$0xf]  ;;  %v2935_v31 = vld [vmem:[#allocation7 + $0x170] sm:$0xf0]  ;;  %v2810_v36 = vor.u32 %v3821_v27, %v2807_v28  ;;  %v2861_v27 = vld [vmem:[#allocation7 + $0xc8] sm:$0xf] }
  0x6b   : > { %1330 = vmatpush.bf16.msrb.mxu3 %v3242_v1  ;;  %v3885_v32 = vld [vmem:[#allocation7 + $0x264] sm:$0xf]  ;;  %v3063_v33 = vld [vmem:[#allocation7 + $0x270] sm:$0xf0]  ;;  %v2938_v37 = vor.u32 %v3853_v29, %v2935_v31  ;;  %v3836_v28 = vld [vmem:[#allocation7 + $0xd4] sm:$0xf0] }
  0x6c   : > { %1289 = vmatpush.bf16.msrb.mxu0 %v2842_v9  ;;  %v3917_v34 = vld [vmem:[#allocation7 + $0x364] sm:$0xf]  ;;  %v3191_v35 = vld [vmem:[#allocation7 + $0x370] sm:$0xf0]  ;;  %v3066_v38 = vor.u32 %v3885_v32, %v3063_v33  ;;  %v2989_v29 = vld [vmem:[#allocation7 + $0x1c8] sm:$0xf] }
  0x6d   : > { %1303 = vmatpush.bf16.msrb.mxu1 %v2970_v12  ;;  %v3817_v39 = vld [vmem:[#allocation7 + $0x44] sm:$0xf]  ;;  %v2791_v40 = vld [vmem:[#allocation7 + $0x50] sm:$0xf0]  ;;  %v3194_v42 = vor.u32 %v3917_v34, %v3191_v35  ;;  %v3840_v12 = vld [vmem:[#allocation7 + $0xf4] sm:$0xf0] }
  0x6e   : > { %1317 = vmatpush.bf16.msrb.mxu2 %v3098_v13  ;;  %v3849_v41 = vld [vmem:[#allocation7 + $0x144] sm:$0xf]  ;;  %v2919_v43 = vld [vmem:[#allocation7 + $0x150] sm:$0xf0]  ;;  %v2794_v48 = vor.u32 %v3817_v39, %v2791_v40  ;;  %v3005_v13 = vld [vmem:[#allocation7 + $0x1e8] sm:$0xf] }
  0x6f   : > { %1331 = vmatpush.bf16.msrb.mxu3 %v3226_v18  ;;  %v3881_v44 = vld [vmem:[#allocation7 + $0x244] sm:$0xf]  ;;  %v3047_v45 = vld [vmem:[#allocation7 + $0x250] sm:$0xf0]  ;;  %v2922_v49 = vor.u32 %v3849_v41, %v2919_v43  ;;  %v3904_v18 = vld [vmem:[#allocation7 + $0x2f4] sm:$0xf0] }
  0x70   : > { %1290 = vmatpush.bf16.msrb.mxu0 %v2826_v24  ;;  %v3913_v46 = vld [vmem:[#allocation7 + $0x344] sm:$0xf]  ;;  %v3175_v47 = vld [vmem:[#allocation7 + $0x350] sm:$0xf0]  ;;  %v3050_v50 = vor.u32 %v3881_v44, %v3047_v45  ;;  %v2878_v24 = vor.u32 %v3840_v12, %v2877_v11  ;;  %v3868_v31 = vld [vmem:[#allocation7 + $0x1d4] sm:$0xf0] }
  0x71   : > { %1304 = vmatpush.bf16.msrb.mxu1 %v2954_v25  ;;  %v3813_v51 = vld [vmem:[#allocation7 + $0x24] sm:$0xf]  ;;  %v2775_v52 = vld [vmem:[#allocation7 + $0x30] sm:$0xf0]  ;;  %v3178_v54 = vor.u32 %v3913_v46, %v3175_v47  ;;  %v3006_v25 = vor.u32 %v3872_v15, %v3005_v13  ;;  %v3117_v32 = vld [vmem:[#allocation7 + $0x2c8] sm:$0xf] }
  0x72   : > { %1318 = vmatpush.bf16.msrb.mxu2 %v3082_v26  ;;  %v3845_v53 = vld [vmem:[#allocation7 + $0x124] sm:$0xf]  ;;  %v2903_v55 = vld [vmem:[#allocation7 + $0x130] sm:$0xf0]  ;;  %v2778_v61 = vor.u32 %v3813_v51, %v2775_v52  ;;  %v3134_v26 = vor.u32 %v3904_v18, %v3133_v16  ;;  %v3900_v33 = vld [vmem:[#allocation7 + $0x2d4] sm:$0xf0] }
  0x73   : > { %1332 = vmatpush.bf16.msrb.mxu3 %v3210_v30  ;;  %v3877_v56 = vld [vmem:[#allocation7 + $0x224] sm:$0xf]  ;;  %v3031_v57 = vld [vmem:[#allocation7 + $0x230] sm:$0xf0]  ;;  %v2906_v0 = vor.u32 %v3845_v53, %v2903_v55  ;;  %v3262_v30 = vor.u32 %v3936_v22, %v3261_v21  ;;  %v3245_v34 = vld [vmem:[#allocation7 + $0x3c8] sm:$0xf] }
  0x74   : > { %1291 = vmatpush.bf16.msrb.mxu0 %v2810_v36  ;;  %v3909_v58 = vld [vmem:[#allocation7 + $0x324] sm:$0xf]  ;;  %v3159_v60 = vld [vmem:[#allocation7 + $0x330] sm:$0xf0]  ;;  %v3034_v1 = vor.u32 %v3877_v56, %v3031_v57  ;;  %v3932_v35 = vld [vmem:[#allocation7 + $0x3d4] sm:$0xf0]  ;;  %v2862_v36 = vor.u32 %v3836_v28, %v2861_v27 }
  0x75   : > { %1305 = vmatpush.bf16.msrb.mxu1 %v2938_v37  ;;  %v3809_v62 = vld [vmem:[#allocation7 + $0x4] sm:$0xf]  ;;  %v2759_v63 = vld [vmem:[#allocation7 + $0x10] sm:$0xf0]  ;;  %v3162_v6 = vor.u32 %v3909_v58, %v3159_v60  ;;  %v2990_v37 = vor.u32 %v3868_v31, %v2989_v29  ;;  %v2845_v39 = vld [vmem:[#allocation7 + $0xa8] sm:$0xf] }
  0x76   : > { %1319 = vmatpush.bf16.msrb.mxu2 %v3066_v38  ;;  %v3841_v2 = vld [vmem:[#allocation7 + $0x104] sm:$0xf]  ;;  %v2887_v3 = vld [vmem:[#allocation7 + $0x110] sm:$0xf0]  ;;  %v2762_v14 = vor.u32 %v3809_v62, %v2759_v63  ;;  %v3118_v38 = vor.u32 %v3900_v33, %v3117_v32  ;;  %v3832_v40 = vld [vmem:[#allocation7 + $0xb4] sm:$0xf0] }
  0x77   : > { %1333 = vmatpush.bf16.msrb.mxu3 %v3194_v42  ;;  %v3873_v4 = vld [vmem:[#allocation7 + $0x204] sm:$0xf]  ;;  %v3015_v7 = vld [vmem:[#allocation7 + $0x210] sm:$0xf0]  ;;  %v2890_v19 = vor.u32 %v3841_v2, %v2887_v3  ;;  %v2973_v41 = vld [vmem:[#allocation7 + $0x1a8] sm:$0xf]  ;;  %v3246_v42 = vor.u32 %v3932_v35, %v3245_v34 }
  0x78   : > { %1292 = vmatpush.bf16.msrb.mxu0 %v2794_v48  ;;  %v3905_v8 = vld [vmem:[#allocation7 + $0x304] sm:$0xf]  ;;  %v3143_v9 = vld [vmem:[#allocation7 + $0x310] sm:$0xf0]  ;;  %v3018_v20 = vor.u32 %v3873_v4, %v3015_v7  ;;  %v3864_v43 = vld [vmem:[#allocation7 + $0x1b4] sm:$0xf0]  ;;  %v2846_v48 = vor.u32 %v3832_v40, %v2845_v39 }
  0x79   : > { %1306 = vmatpush.bf16.msrb.mxu1 %v2922_v49  ;;  %v3146_v23 = vor.u32 %v3905_v8, %v3143_v9  ;;  %v3101_v44 = vld [vmem:[#allocation7 + $0x2a8] sm:$0xf]  ;;  %v3896_v45 = vld [vmem:[#allocation7 + $0x2b4] sm:$0xf0]  ;;  %v2974_v49 = vor.u32 %v3864_v43, %v2973_v41 }
  0x7a   : > { %1320 = vmatpush.bf16.msrb.mxu2 %v3050_v50  ;;  %v3229_v46 = vld [vmem:[#allocation7 + $0x3a8] sm:$0xf]  ;;  %v3928_v47 = vld [vmem:[#allocation7 + $0x3b4] sm:$0xf0]  ;;  %v3102_v50 = vor.u32 %v3896_v45, %v3101_v44 }
  0x7b   : > { %1334 = vmatpush.bf16.msrb.mxu3 %v3178_v54  ;;  %v2829_v51 = vld [vmem:[#allocation7 + $0x88] sm:$0xf]  ;;  %v3828_v52 = vld [vmem:[#allocation7 + $0x94] sm:$0xf0]  ;;  %v3230_v54 = vor.u32 %v3928_v47, %v3229_v46 }
  0x7c   : > { %1293 = vmatpush.bf16.msrb.mxu0 %v2778_v61  ;;  %v2957_v53 = vld [vmem:[#allocation7 + $0x188] sm:$0xf]  ;;  %v3860_v55 = vld [vmem:[#allocation7 + $0x194] sm:$0xf0]  ;;  %v2830_v61 = vor.u32 %v3828_v52, %v2829_v51  ;;  %v3007_v52 = vld [vmem:[#allocation7 + $0x1f8] sm:$0xf0] }
  0x7d   : > { %1307 = vmatpush.bf16.msrb.mxu1 %v2906_v0  ;;  %v3085_v56 = vld [vmem:[#allocation7 + $0x288] sm:$0xf]  ;;  %v3892_v57 = vld [vmem:[#allocation7 + $0x294] sm:$0xf0]  ;;  %v2958_v62 = vor.u32 %v3860_v55, %v2957_v53  ;;  %v3902_v53 = vld [vmem:[#allocation7 + $0x2ec] sm:$0xf] }
  0x7e   : > { %1321 = vmatpush.bf16.msrb.mxu2 %v3034_v1  ;;  %v3213_v58 = vld [vmem:[#allocation7 + $0x388] sm:$0xf]  ;;  %v3924_v60 = vld [vmem:[#allocation7 + $0x394] sm:$0xf0]  ;;  %v3086_v63 = vor.u32 %v3892_v57, %v3085_v56  ;;  %v3934_v57 = vld [vmem:[#allocation7 + $0x3ec] sm:$0xf] }
  0x7f   : > { %1335 = vmatpush.bf16.msrb.mxu3 %v3162_v6  ;;  %v2813_v0 = vld [vmem:[#allocation7 + $0x68] sm:$0xf]  ;;  %v3824_v1 = vld [vmem:[#allocation7 + $0x74] sm:$0xf0]  ;;  %v3214_v3 = vor.u32 %v3924_v60, %v3213_v58  ;;  %v3263_v58 = vld [vmem:[#allocation7 + $0x3f8] sm:$0xf0] }
  0x80   : > { %1294 = vmatpush.bf16.msrb.mxu0 %v2762_v14  ;;  %v2941_v2 = vld [vmem:[#allocation7 + $0x168] sm:$0xf]  ;;  %v3856_v4 = vld [vmem:[#allocation7 + $0x174] sm:$0xf0]  ;;  %v2814_v11 = vor.u32 %v3824_v1, %v2813_v0  ;;  %v3834_v0 = vld [vmem:[#allocation7 + $0xcc] sm:$0xf] }
  0x81   : > { %1308 = vmatpush.bf16.msrb.mxu1 %v2890_v19  ;;  %v3069_v6 = vld [vmem:[#allocation7 + $0x268] sm:$0xf]  ;;  %v3888_v7 = vld [vmem:[#allocation7 + $0x274] sm:$0xf0]  ;;  %v2942_v12 = vor.u32 %v3856_v4, %v2941_v2  ;;  %v2863_v1 = vld [vmem:[#allocation7 + $0xd8] sm:$0xf0] }
  0x82   : > { %1322 = vmatpush.bf16.msrb.mxu2 %v3018_v20  ;;  %v3197_v8 = vld [vmem:[#allocation7 + $0x368] sm:$0xf]  ;;  %v3920_v9 = vld [vmem:[#allocation7 + $0x374] sm:$0xf0]  ;;  %v3070_v13 = vor.u32 %v3888_v7, %v3069_v6  ;;  %v3866_v2 = vld [vmem:[#allocation7 + $0x1cc] sm:$0xf] }
  0x83   : > { %1336 = vmatpush.bf16.msrb.mxu3 %v3146_v23  ;;  %1295 = vmatmul.bf16.vlgmr.msrb.gmra.mxu0 %v4666_v5  ;;  %v2797_v14 = vld [vmem:[#allocation7 + $0x48] sm:$0xf]  ;;  %v3820_v15 = vld [vmem:[#allocation7 + $0x54] sm:$0xf0]  ;;  %v3198_v18 = vor.u32 %v3920_v9, %v3197_v8  ;;  %v2991_v4 = vld [vmem:[#allocation7 + $0x1d8] sm:$0xf0] }
  0x84   : > { %1343 = vmatpush.bf16.msra.mxu0 %v2878_v24  ;;  %1309 = vmatmul.bf16.vlgmr.msrb.gmra.mxu1 %v4674_v17  ;;  %v2925_v16 = vld [vmem:[#allocation7 + $0x148] sm:$0xf]  ;;  %v3852_v19 = vld [vmem:[#allocation7 + $0x154] sm:$0xf0]  ;;  %v2798_v24 = vor.u32 %v3820_v15, %v2797_v14  ;;  %v3898_v6 = vld [vmem:[#allocation7 + $0x2cc] sm:$0xf] }
  0x85   : > { %1357 = vmatpush.bf16.msra.mxu1 %v3006_v25  ;;  %1323 = vmatmul.bf16.vlgmr.msrb.gmra.mxu2 %v4661_v59  ;;  %v3053_v20 = vld [vmem:[#allocation7 + $0x248] sm:$0xf]  ;;  %v3884_v21 = vld [vmem:[#allocation7 + $0x254] sm:$0xf0]  ;;  %v2926_v25 = vor.u32 %v3852_v19, %v2925_v16  ;;  %v3119_v7 = vld [vmem:[#allocation7 + $0x2d8] sm:$0xf0] }
  0x86   : > { %1371 = vmatpush.bf16.msra.mxu2 %v3134_v26  ;;  %1337 = vmatmul.bf16.vlgmr.msrb.gmra.mxu3 %v4671_v10  ;;  %v3181_v22 = vld [vmem:[#allocation7 + $0x348] sm:$0xf]  ;;  %v3916_v23 = vld [vmem:[#allocation7 + $0x354] sm:$0xf0]  ;;  %v3054_v26 = vor.u32 %v3884_v21, %v3053_v20  ;;  %v3930_v8 = vld [vmem:[#allocation7 + $0x3cc] sm:$0xf] }
  0x87   : > { %1385 = vmatpush.bf16.msra.mxu3 %v3262_v30  ;;  %v2781_v27 = vld [vmem:[#allocation7 + $0x28] sm:$0xf]  ;;  %v3816_v28 = vld [vmem:[#allocation7 + $0x34] sm:$0xf0]  ;;  %v3182_v30 = vor.u32 %v3916_v23, %v3181_v22  ;;  %v3247_v9 = vld [vmem:[#allocation7 + $0x3d8] sm:$0xf0] }
  0x88   : > { %1344 = vmatpush.bf16.msra.mxu0 %v2862_v36  ;;  %v2909_v29 = vld [vmem:[#allocation7 + $0x128] sm:$0xf]  ;;  %v3848_v31 = vld [vmem:[#allocation7 + $0x134] sm:$0xf0]  ;;  %v2782_v36 = vor.u32 %v3816_v28, %v2781_v27  ;;  %v3830_v14 = vld [vmem:[#allocation7 + $0xac] sm:$0xf] }
  0x89   : > { %1358 = vmatpush.bf16.msra.mxu1 %v2990_v37  ;;  %v3037_v32 = vld [vmem:[#allocation7 + $0x228] sm:$0xf]  ;;  %v3880_v33 = vld [vmem:[#allocation7 + $0x234] sm:$0xf0]  ;;  %v2910_v39 = vor.u32 %v3848_v31, %v2909_v29  ;;  %v2847_v15 = vld [vmem:[#allocation7 + $0xb8] sm:$0xf0] }
  0x8a   : > { %1372 = vmatpush.bf16.msra.mxu2 %v3118_v38  ;;  %v3165_v34 = vld [vmem:[#allocation7 + $0x328] sm:$0xf]  ;;  %v3912_v35 = vld [vmem:[#allocation7 + $0x334] sm:$0xf0]  ;;  %v3038_v40 = vor.u32 %v3880_v33, %v3037_v32  ;;  %v3862_v16 = vld [vmem:[#allocation7 + $0x1ac] sm:$0xf] }
  0x8b   : > { %1386 = vmatpush.bf16.msra.mxu3 %v3246_v42  ;;  %v2765_v37 = vld [vmem:[#allocation7 + $0x8] sm:$0xf]  ;;  %v3812_v38 = vld [vmem:[#allocation7 + $0x14] sm:$0xf0]  ;;  %v3166_v44 = vor.u32 %v3912_v35, %v3165_v34  ;;  %v2975_v19 = vld [vmem:[#allocation7 + $0x1b8] sm:$0xf0] }
  0x8c   : > { %1345 = vmatpush.bf16.msra.mxu0 %v2846_v48  ;;  %v2893_v41 = vld [vmem:[#allocation7 + $0x108] sm:$0xf]  ;;  %v3844_v42 = vld [vmem:[#allocation7 + $0x114] sm:$0xf0]  ;;  %v3838_v48 = vld [vmem:[#allocation7 + $0xec] sm:$0xf]  ;;  %v2766_v51 = vor.u32 %v3812_v38, %v2765_v37 }
  0x8d   : > { %1359 = vmatpush.bf16.msra.mxu1 %v2974_v49  ;;  %v3021_v43 = vld [vmem:[#allocation7 + $0x208] sm:$0xf]  ;;  %v3876_v45 = vld [vmem:[#allocation7 + $0x214] sm:$0xf0]  ;;  %v2879_v49 = vld [vmem:[#allocation7 + $0xf8] sm:$0xf0]  ;;  %v2894_v55 = vor.u32 %v3844_v42, %v2893_v41 }
  0x8e   : > { %1373 = vmatpush.bf16.msra.mxu2 %v3102_v50  ;;  %v3149_v46 = vld [vmem:[#allocation7 + $0x308] sm:$0xf]  ;;  %v3908_v47 = vld [vmem:[#allocation7 + $0x314] sm:$0xf0]  ;;  %v3870_v50 = vld [vmem:[#allocation7 + $0x1ec] sm:$0xf]  ;;  %v3022_v56 = vor.u32 %v3876_v45, %v3021_v43 }
  0x8f   : > { %1387 = vmatpush.bf16.msra.mxu3 %v3230_v54  ;;  %v3135_v54 = vld [vmem:[#allocation7 + $0x2f8] sm:$0xf0]  ;;  %v3150_v60 = vor.u32 %v3908_v47, %v3149_v46  ;;  %v3894_v20 = vld [vmem:[#allocation7 + $0x2ac] sm:$0xf] }
  0x90   : > { %1346 = vmatpush.bf16.msra.mxu0 %v2830_v61  ;;  %v2882_v61 = vor.u32 %v3838_v48, %v2879_v49  ;;  %v3103_v21 = vld [vmem:[#allocation7 + $0x2b8] sm:$0xf0]  ;;  %v3926_v22 = vld [vmem:[#allocation7 + $0x3ac] sm:$0xf] }
  0x91   : > { %1360 = vmatpush.bf16.msra.mxu1 %v2958_v62  ;;  %v3010_v62 = vor.u32 %v3870_v50, %v3007_v52  ;;  %v3231_v23 = vld [vmem:[#allocation7 + $0x3b8] sm:$0xf0]  ;;  %v3826_v27 = vld [vmem:[#allocation7 + $0x8c] sm:$0xf] }
  0x92   : > { %1374 = vmatpush.bf16.msra.mxu2 %v3086_v63  ;;  %v3138_v63 = vor.u32 %v3902_v53, %v3135_v54  ;;  %v2831_v28 = vld [vmem:[#allocation7 + $0x98] sm:$0xf0]  ;;  %v3858_v29 = vld [vmem:[#allocation7 + $0x18c] sm:$0xf] }
  0x93   : > { %1388 = vmatpush.bf16.msra.mxu3 %v3214_v3  ;;  %v3266_v3 = vor.u32 %v3934_v57, %v3263_v58  ;;  %v2959_v31 = vld [vmem:[#allocation7 + $0x198] sm:$0xf0]  ;;  %v3890_v32 = vld [vmem:[#allocation7 + $0x28c] sm:$0xf] }
  0x94   : > { %1347 = vmatpush.bf16.msra.mxu0 %v2814_v11  ;;  %v2866_v11 = vor.u32 %v3834_v0, %v2863_v1  ;;  %v3087_v33 = vld [vmem:[#allocation7 + $0x298] sm:$0xf0]  ;;  %v3922_v34 = vld [vmem:[#allocation7 + $0x38c] sm:$0xf]  ;;  %v2962_v37 = vor.u32 %v3858_v29, %v2959_v31  ;;  %v3653_v29 = vld [vmem:[#allocation8 + $0x2e0] sm:$0xf] }
  0x95   : > { %1361 = vmatpush.bf16.msra.mxu1 %v2942_v12  ;;  %v2994_v12 = vor.u32 %v3866_v2, %v2991_v4  ;;  %v3215_v35 = vld [vmem:[#allocation7 + $0x398] sm:$0xf0]  ;;  %v3090_v38 = vor.u32 %v3890_v32, %v3087_v33  ;;  %v3854_v41 = vld [vmem:[#allocation7 + $0x16c] sm:$0xf]  ;;  %v3781_v33 = vld [vmem:[#allocation8 + $0x3e0] sm:$0xf] }
  0x96   : > { %1375 = vmatpush.bf16.msra.mxu2 %v3070_v13  ;;  %v3122_v13 = vor.u32 %v3898_v6, %v3119_v7  ;;  %v3218_v42 = vor.u32 %v3922_v34, %v3215_v35  ;;  %v2943_v43 = vld [vmem:[#allocation7 + $0x178] sm:$0xf0]  ;;  %v3918_v46 = vld [vmem:[#allocation7 + $0x36c] sm:$0xf]  ;;  %v4067_v34 = vld [vmem:[#allocation8 + $0x3ec] sm:$0xf0] }
  0x97   : > { %1389 = vmatpush.bf16.msra.mxu3 %v3198_v18  ;;  %v3250_v18 = vor.u32 %v3930_v8, %v3247_v9  ;;  %v3071_v45 = vld [vmem:[#allocation7 + $0x278] sm:$0xf0]  ;;  %v2946_v49 = vor.u32 %v3854_v41, %v2943_v43  ;;  %v3850_v53 = vld [vmem:[#allocation7 + $0x14c] sm:$0xf]  ;;  %v3509_v41 = vld [vmem:[#allocation8 + $0x1c0] sm:$0xf] }
  0x98   : > { %1348 = vmatpush.bf16.msra.mxu0 %v2798_v24  ;;  %v2850_v24 = vor.u32 %v3830_v14, %v2847_v15  ;;  %v3199_v47 = vld [vmem:[#allocation7 + $0x378] sm:$0xf0]  ;;  %v3914_v58 = vld [vmem:[#allocation7 + $0x34c] sm:$0xf]  ;;  %v3999_v43 = vld [vmem:[#allocation8 + $0x1cc] sm:$0xf0] }
  0x99   : > { %1362 = vmatpush.bf16.msra.mxu1 %v2926_v25  ;;  %v2978_v25 = vor.u32 %v3862_v16, %v2975_v19  ;;  %v2799_v52 = vld [vmem:[#allocation7 + $0x58] sm:$0xf0]  ;;  %v3202_v54 = vor.u32 %v3918_v46, %v3199_v47  ;;  %v3814_v0 = vld [vmem:[#allocation7 + $0x2c] sm:$0xf]  ;;  %v3765_v46 = vld [vmem:[#allocation8 + $0x3c0] sm:$0xf] }
  0x9a   : > { %1376 = vmatpush.bf16.msra.mxu2 %v3054_v26  ;;  %v3106_v26 = vor.u32 %v3894_v20, %v3103_v21  ;;  %v3055_v57 = vld [vmem:[#allocation7 + $0x258] sm:$0xf0]  ;;  %v3846_v2 = vld [vmem:[#allocation7 + $0x12c] sm:$0xf]  ;;  %v4063_v47 = vld [vmem:[#allocation8 + $0x3cc] sm:$0xf0] }
  0x9b   : > { %1390 = vmatpush.bf16.msra.mxu3 %v3182_v30  ;;  %v3234_v30 = vor.u32 %v3926_v22, %v3231_v23  ;;  %v2783_v1 = vld [vmem:[#allocation7 + $0x38] sm:$0xf0]  ;;  %v3878_v6 = vld [vmem:[#allocation7 + $0x22c] sm:$0xf] }
  0x9c   : > { %1349 = vmatpush.bf16.msra.mxu0 %v2782_v36  ;;  %v2834_v36 = vor.u32 %v3826_v27, %v2831_v28  ;;  %v2911_v4 = vld [vmem:[#allocation7 + $0x138] sm:$0xf0]  ;;  %v3910_v8 = vld [vmem:[#allocation7 + $0x32c] sm:$0xf]  ;;  %v4003_v28 = vld [vmem:[#allocation8 + $0x1ec] sm:$0xf0] }
  0x9d   : > { %1363 = vmatpush.bf16.msra.mxu1 %v2910_v39  ;;  %v3822_v39 = vld [vmem:[#allocation7 + $0x6c] sm:$0xf]  ;;  %v3039_v7 = vld [vmem:[#allocation7 + $0x238] sm:$0xf0]  ;;  %v2914_v14 = vor.u32 %v3846_v2, %v2911_v4  ;;  %v3605_v4 = vld [vmem:[#allocation8 + $0x280] sm:$0xf] }
  0x9e   : > { %1377 = vmatpush.bf16.msra.mxu2 %v3038_v40  ;;  %v2815_v40 = vld [vmem:[#allocation7 + $0x78] sm:$0xf0]  ;;  %v3042_v15 = vor.u32 %v3878_v6, %v3039_v7  ;;  %v3842_v16 = vld [vmem:[#allocation7 + $0x10c] sm:$0xf]  ;;  %v3733_v6 = vld [vmem:[#allocation8 + $0x380] sm:$0xf] }
  0x9f   : > { %1391 = vmatpush.bf16.msra.mxu3 %v3166_v44  ;;  %v3886_v44 = vld [vmem:[#allocation7 + $0x26c] sm:$0xf]  ;;  %v2818_v48 = vor.u32 %v3822_v39, %v2815_v40  ;;  %v3167_v9 = vld [vmem:[#allocation7 + $0x338] sm:$0xf0]  ;;  %v3381_v39 = vld [vmem:[#allocation8 + $0xc0] sm:$0xf] }
  0xa0   : > { %1350 = vmatpush.bf16.msra.mxu0 %v2766_v51  ;;  %v3074_v50 = vor.u32 %v3886_v44, %v3071_v45  ;;  %v3818_v51 = vld [vmem:[#allocation7 + $0x4c] sm:$0xf]  ;;  %v3170_v20 = vor.u32 %v3910_v8, %v3167_v9  ;;  %v3023_v21 = vld [vmem:[#allocation7 + $0x218] sm:$0xf0]  ;;  %v3967_v40 = vld [vmem:[#allocation8 + $0xcc] sm:$0xf0] }
  0xa1   : > { %1364 = vmatpush.bf16.msra.mxu1 %v2894_v55  ;;  %v2927_v55 = vld [vmem:[#allocation7 + $0x158] sm:$0xf0]  ;;  %v3874_v19 = vld [vmem:[#allocation7 + $0x20c] sm:$0xf]  ;;  %v3637_v44 = vld [vmem:[#allocation8 + $0x2c0] sm:$0xf] }
  0xa2   : > { %1378 = vmatpush.bf16.msra.mxu2 %v3022_v56  ;;  %v3882_v56 = vld [vmem:[#allocation7 + $0x24c] sm:$0xf]  ;;  %v3151_v23 = vld [vmem:[#allocation7 + $0x318] sm:$0xf0]  ;;  %v3026_v32 = vor.u32 %v3874_v19, %v3023_v21  ;;  %v4031_v45 = vld [vmem:[#allocation8 + $0x2cc] sm:$0xf0] }
  0xa3   : > { %1392 = vmatpush.bf16.msra.mxu3 %v3150_v60  ;;  %1351 = vmatmul.bf16.vlgmr.msra.gmra.mxu0 %v4666_v5  ;;  %v3183_v60 = vld [vmem:[#allocation7 + $0x358] sm:$0xf0]  ;;  %v3906_v22 = vld [vmem:[#allocation7 + $0x30c] sm:$0xf]  ;;  %v3333_v9 = vld [vmem:[#allocation8 + $0x60] sm:$0xf] }
  0xa4   : > { %1399 = vmatpush.bf16.msrb.mxu0 %v2882_v61  ;;  %1365 = vmatmul.bf16.vlgmr.msra.gmra.mxu1 %v4674_v17  ;;  %v2802_v61 = vor.u32 %v3818_v51, %v2799_v52  ;;  %v3154_v35 = vor.u32 %v3906_v22, %v3151_v23  ;;  %v3365_v51 = vld [vmem:[#allocation8 + $0xa0] sm:$0xf]  ;;  %v3963_v52 = vld [vmem:[#allocation8 + $0xac] sm:$0xf0] }
  0xa5   : > { %1413 = vmatpush.bf16.msrb.mxu1 %v3010_v62  ;;  %1379 = vmatmul.bf16.vlgmr.msra.gmra.mxu2 %v4661_v59  ;;  %v2930_v62 = vor.u32 %v3850_v53, %v2927_v55  ;;  %v3493_v53 = vld [vmem:[#allocation8 + $0x1a0] sm:$0xf]  ;;  %v3995_v55 = vld [vmem:[#allocation8 + $0x1ac] sm:$0xf0] }
  0xa6   : > { %1427 = vmatpush.bf16.msrb.mxu2 %v3138_v63  ;;  %1393 = vmatmul.bf16.vlgmr.msra.gmra.mxu3 %v4671_v10  ;;  %v3058_v63 = vor.u32 %v3882_v56, %v3055_v57  ;;  %v3621_v56 = vld [vmem:[#allocation8 + $0x2a0] sm:$0xf]  ;;  %v4027_v57 = vld [vmem:[#allocation8 + $0x2ac] sm:$0xf0] }
  0xa7   : > { %1441 = vmatpush.bf16.msrb.mxu3 %v3266_v3  ;;  %v3186_v3 = vor.u32 %v3914_v58, %v3183_v60  ;;  %v3749_v58 = vld [vmem:[#allocation8 + $0x3a0] sm:$0xf]  ;;  %v4059_v60 = vld [vmem:[#allocation8 + $0x3ac] sm:$0xf0] }
  0xa8   : > { %1400 = vmatpush.bf16.msrb.mxu0 %v2866_v11  ;;  %v2786_v11 = vor.u32 %v3814_v0, %v2783_v1  ;;  %v3349_v0 = vld [vmem:[#allocation8 + $0x80] sm:$0xf]  ;;  %v3750_v2 = vor.u32 %v4059_v60, %v3749_v58  ;;  %v4051_v19 = vld [vmem:[#allocation8 + $0x36c] sm:$0xf0]  ;;  %v4001_v58 = vld [vmem:[#allocation8 + $0x1e4] sm:$0xf] }
  0xa9   : > { %1414 = vmatpush.bf16.msrb.mxu1 %v2994_v12  ;;  %v3810_v12 = vld [vmem:[#allocation7 + $0xc] sm:$0xf]  ;;  %v3477_v1 = vld [vmem:[#allocation8 + $0x180] sm:$0xf]  ;;  %v3527_v60 = vld [vmem:[#allocation8 + $0x1f0] sm:$0xf0] }
  0xaa   : > { %1428 = vmatpush.bf16.msrb.mxu2 %v3122_v13  ;;  %v2767_v13 = vld [vmem:[#allocation7 + $0x18] sm:$0xf0]  ;;  %v3317_v23 = vld [vmem:[#allocation8 + $0x40] sm:$0xf] }
  0xab   : > { %1442 = vmatpush.bf16.msrb.mxu3 %v3250_v18  ;;  %v2895_v18 = vld [vmem:[#allocation7 + $0x118] sm:$0xf0]  ;;  %v2770_v27 = vor.u32 %v3810_v12, %v2767_v13  ;;  %v3461_v12 = vld [vmem:[#allocation8 + $0x160] sm:$0xf] }
  0xac   : > { %1401 = vmatpush.bf16.msrb.mxu0 %v2850_v24  ;;  %v3397_v24 = vld [vmem:[#allocation8 + $0xe0] sm:$0xf]  ;;  %v2898_v31 = vor.u32 %v3842_v16, %v2895_v18  ;;  %v4019_v16 = vld [vmem:[#allocation8 + $0x26c] sm:$0xf0] }
  0xad   : > { %1415 = vmatpush.bf16.msrb.mxu1 %v2978_v25  ;;  %v3971_v25 = vld [vmem:[#allocation8 + $0xec] sm:$0xf0]  ;;  %v3717_v18 = vld [vmem:[#allocation8 + $0x360] sm:$0xf] }
  0xae   : > { %1429 = vmatpush.bf16.msrb.mxu2 %v3106_v26  ;;  %v3525_v26 = vld [vmem:[#allocation8 + $0x1e0] sm:$0xf] }
  0xaf   : > { %1443 = vmatpush.bf16.msrb.mxu3 %v3234_v30  ;;  %v4035_v30 = vld [vmem:[#allocation8 + $0x2ec] sm:$0xf0] }
  0xb0   : > { %1402 = vmatpush.bf16.msrb.mxu0 %v2834_v36  ;;  %v3398_v36 = vor.u32 %v3971_v25, %v3397_v24  ;;  %v3951_v24 = vld [vmem:[#allocation8 + $0x4c] sm:$0xf0]  ;;  %v3445_v25 = vld [vmem:[#allocation8 + $0x140] sm:$0xf] }
  0xb1   : > { %1416 = vmatpush.bf16.msrb.mxu1 %v2962_v37  ;;  %v3526_v37 = vor.u32 %v4003_v28, %v3525_v26  ;;  %v3718_v26 = vor.u32 %v4051_v19, %v3717_v18  ;;  %v3573_v28 = vld [vmem:[#allocation8 + $0x240] sm:$0xf]  ;;  %v3511_v19 = vld [vmem:[#allocation8 + $0x1d0] sm:$0xf0] }
  0xb2   : > { %1430 = vmatpush.bf16.msrb.mxu2 %v3090_v38  ;;  %v3654_v38 = vor.u32 %v4035_v30, %v3653_v29  ;;  %v4015_v29 = vld [vmem:[#allocation8 + $0x24c] sm:$0xf0]  ;;  %v3701_v30 = vld [vmem:[#allocation8 + $0x340] sm:$0xf] }
  0xb3   : > { %1444 = vmatpush.bf16.msrb.mxu3 %v3218_v42  ;;  %v3782_v42 = vor.u32 %v4067_v34, %v3781_v33  ;;  %v3574_v34 = vor.u32 %v4015_v29, %v3573_v28 }
  0xb4   : > { %1403 = vmatpush.bf16.msrb.mxu0 %v2818_v48  ;;  %v3382_v48 = vor.u32 %v3967_v40, %v3381_v39  ;;  %v3979_v39 = vld [vmem:[#allocation8 + $0x12c] sm:$0xf0]  ;;  %v3557_v40 = vld [vmem:[#allocation8 + $0x220] sm:$0xf] }
  0xb5   : > { %1417 = vmatpush.bf16.msrb.mxu1 %v2946_v49  ;;  %v3510_v49 = vor.u32 %v3999_v43, %v3509_v41  ;;  %v4011_v41 = vld [vmem:[#allocation8 + $0x22c] sm:$0xf0] }
  0xb6   : > { %1431 = vmatpush.bf16.msrb.mxu2 %v3074_v50  ;;  %v3638_v50 = vor.u32 %v4031_v45, %v3637_v44  ;;  %v4043_v43 = vld [vmem:[#allocation8 + $0x32c] sm:$0xf0]  ;;  %v3285_v44 = vld [vmem:[#allocation8] sm:$0xf] }
  0xb7   : > { %1445 = vmatpush.bf16.msrb.mxu3 %v3202_v54  ;;  %v3766_v54 = vor.u32 %v4063_v47, %v3765_v46  ;;  %v3943_v46 = vld [vmem:[#allocation8 + $0xc] sm:$0xf0]  ;;  %v3413_v47 = vld [vmem:[#allocation8 + $0x100] sm:$0xf] }
  0xb8   : > { %1404 = vmatpush.bf16.msrb.mxu0 %v2802_v61  ;;  %v3366_v61 = vor.u32 %v3963_v52, %v3365_v51  ;;  %v3541_v51 = vld [vmem:[#allocation8 + $0x200] sm:$0xf]  ;;  %v4007_v52 = vld [vmem:[#allocation8 + $0x20c] sm:$0xf0] }
  0xb9   : > { %1418 = vmatpush.bf16.msrb.mxu1 %v2930_v62  ;;  %v3494_v62 = vor.u32 %v3995_v55, %v3493_v53  ;;  %v3669_v53 = vld [vmem:[#allocation8 + $0x300] sm:$0xf]  ;;  %v4039_v55 = vld [vmem:[#allocation8 + $0x30c] sm:$0xf0] }
  0xba   : > { %1432 = vmatpush.bf16.msrb.mxu2 %v3058_v63  ;;  %v3622_v63 = vor.u32 %v4027_v57, %v3621_v56  ;;  %v3969_v56 = vld [vmem:[#allocation8 + $0xe4] sm:$0xf]  ;;  %v3399_v57 = vld [vmem:[#allocation8 + $0xf0] sm:$0xf0] }
  0xbb   : > { %1446 = vmatpush.bf16.msrb.mxu3 %v3186_v3  ;;  %v3991_v3 = vld [vmem:[#allocation8 + $0x18c] sm:$0xf0] }
  0xbc   : > { %1405 = vmatpush.bf16.msrb.mxu0 %v2786_v11  ;;  %v3955_v11 = vld [vmem:[#allocation8 + $0x6c] sm:$0xf0] }
  0xbd   : > { %1419 = vmatpush.bf16.msrb.mxu1 %v2914_v14  ;;  %v3987_v14 = vld [vmem:[#allocation8 + $0x16c] sm:$0xf0] }
  0xbe   : > { %1433 = vmatpush.bf16.msrb.mxu2 %v3042_v15  ;;  %v3589_v15 = vld [vmem:[#allocation8 + $0x260] sm:$0xf]  ;;  %v3462_v21 = vor.u32 %v3987_v14, %v3461_v12  ;;  %v3530_v12 = vor.u32 %v4001_v58, %v3527_v60  ;;  %v3997_v14 = vld [vmem:[#allocation8 + $0x1c4] sm:$0xf]  ;;  %v3463_v60 = vld [vmem:[#allocation8 + $0x170] sm:$0xf0] }
  0xbf   : > { %1447 = vmatpush.bf16.msrb.mxu3 %v3170_v20  ;;  %v3334_v20 = vor.u32 %v3955_v11, %v3333_v9  ;;  %v3590_v22 = vor.u32 %v4019_v16, %v3589_v15  ;;  %v3938_v9 = vld [vmem:[%s4645_s14 + $0xc] sm:$0xf]  ;;  %v3279_v11 = vld [vmem:[%s4645_s14 + $0x18] sm:$0xf0]  ;;  %v3937_v15 = vld [vmem:[%s4645_s14 + $0x4] sm:$0xf]  ;;  %v3514_v29 = vor.u32 %v3997_v14, %v3511_v19 }
  0xc0   : > { %1406 = vmatpush.bf16.msrb.mxu0 %v2770_v27  ;;  %v3983_v27 = vld [vmem:[#allocation8 + $0x14c] sm:$0xf0]  ;;  %v3271_v16 = vld [vmem:[%s4645_s14 + $0x10] sm:$0xf0]  ;;  %v3945_v14 = vld [vmem:[#allocation8 + $0x24] sm:$0xf] }
  0xc1   : > { %1420 = vmatpush.bf16.msrb.mxu1 %v2898_v31  ;;  %v4047_v31 = vld [vmem:[#allocation8 + $0x34c] sm:$0xf0]  ;;  %v3446_v33 = vor.u32 %v3983_v27, %v3445_v25  ;;  %v4705_v28 = vor.u32 %v3937_v15, %v3271_v16  ;;  %v3303_v15 = vld [vmem:[#allocation8 + $0x30] sm:$0xf0]  ;;  %v3977_v16 = vld [vmem:[#allocation8 + $0x124] sm:$0xf] }
  0xc2   : > { %1434 = vmatpush.bf16.msrb.mxu2 %v3026_v32  ;;  %v3318_v32 = vor.u32 %v3951_v24, %v3317_v23  ;;  %v4061_v23 = vld [vmem:[#allocation8 + $0x3c4] sm:$0xf]  ;;  %v3767_v24 = vld [vmem:[#allocation8 + $0x3d0] sm:$0xf0] }
  0xc3   : > { %1448 = vmatpush.bf16.msrb.mxu3 %v3154_v35  ;;  %1407 = vmatmul.bf16.vlgmr.msrb.gmra.mxu0 %v4666_v5  ;;  %v4023_v5 = vld [vmem:[#allocation8 + $0x28c] sm:$0xf0]  ;;  %v3301_v35 = vld [vmem:[#allocation8 + $0x20] sm:$0xf]  ;;  %v3431_v19 = vld [vmem:[#allocation8 + $0x130] sm:$0xf0] }
  0xc4   : > { %2265 = vmatpush.bf16.msra.mxu0 %v3398_v36  ;;  %1421 = vmatmul.bf16.vlgmr.msrb.gmra.mxu1 %v4674_v17  ;;  %v3478_v17 = vor.u32 %v3991_v3, %v3477_v1  ;;  %v3606_v8 = vor.u32 %v4023_v5, %v3605_v4  ;;  %v3947_v36 = vld [vmem:[#allocation8 + $0x2c] sm:$0xf0]  ;;  %v3965_v3 = vld [vmem:[#allocation8 + $0xc4] sm:$0xf]  ;;  %v3383_v4 = vld [vmem:[#allocation8 + $0xd0] sm:$0xf0] }
  0xc5   : > { %2279 = vmatpush.bf16.msra.mxu1 %v3526_v37  ;;  %1435 = vmatmul.bf16.vlgmr.msrb.gmra.mxu2 %v4661_v59  ;;  %v3959_v59 = vld [vmem:[#allocation8 + $0x8c] sm:$0xf0]  ;;  %v3429_v37 = vld [vmem:[#allocation8 + $0x120] sm:$0xf]  ;;  %v3302_v45 = vor.u32 %v3947_v36, %v3301_v35  ;;  %v3277_v5 = vld [vmem:[%s4645_s14 + $0x8] sm:$0xf]  ;;  %v3386_v27 = vor.u32 %v3965_v3, %v3383_v4 }
  0xc6   : > { %2293 = vmatpush.bf16.msra.mxu2 %v3654_v38  ;;  %1449 = vmatmul.bf16.vlgmr.msrb.gmra.mxu3 %v4671_v10  ;;  %v4055_v10 = vld [vmem:[#allocation8 + $0x38c] sm:$0xf0]  ;;  %v3350_v7 = vor.u32 %v3959_v59, %v3349_v0  ;;  %v3702_v38 = vor.u32 %v4047_v31, %v3701_v30  ;;  %v4065_v0 = vld [vmem:[#allocation8 + $0x3e4] sm:$0xf]  ;;  %v3783_v59 = vld [vmem:[#allocation8 + $0x3f0] sm:$0xf0] }
  0xc7   : > { %2307 = vmatpush.bf16.msra.mxu3 %v3782_v42  ;;  %v3734_v13 = vor.u32 %v4055_v10, %v3733_v6  ;;  %v3685_v42 = vld [vmem:[#allocation8 + $0x320] sm:$0xf]  ;;  %v3940_v6 = vld [vmem:[%s4645_s14 + $0x14] sm:$0xf0]  ;;  %v3786_v18 = vor.u32 %v4065_v0, %v3783_v59  ;;  %v3961_v31 = vld [vmem:[#allocation8 + $0xa4] sm:$0xf] }
  0xc8   : > { %2266 = vmatpush.bf16.msra.mxu0 %v3382_v48  ;;  %v3975_v48 = vld [vmem:[#allocation8 + $0x10c] sm:$0xf0]  ;;  %v3269_v10 = vld [vmem:[%s4645_s14] sm:$0xf]  ;;  %v3495_v35 = vld [vmem:[#allocation8 + $0x1b0] sm:$0xf0] }
  0xc9   : > { %2280 = vmatpush.bf16.msra.mxu1 %v3510_v49  ;;  %v3430_v49 = vor.u32 %v3979_v39, %v3429_v37  ;;  %v3414_v1 = vor.u32 %v3975_v48, %v3413_v47  ;;  %v4025_v36 = vld [vmem:[#allocation8 + $0x2a4] sm:$0xf]  ;;  %v3623_v37 = vld [vmem:[#allocation8 + $0x2b0] sm:$0xf0] }
  0xca   : > { %2294 = vmatpush.bf16.msra.mxu2 %v3638_v50  ;;  %v3558_v50 = vor.u32 %v4011_v41, %v3557_v40  ;;  %v3751_v39 = vld [vmem:[#allocation8 + $0x3b0] sm:$0xf0]  ;;  %v4021_v48 = vld [vmem:[#allocation8 + $0x284] sm:$0xf] }
  0xcb   : > { %2308 = vmatpush.bf16.msra.mxu3 %v3766_v54  ;;  %v3686_v54 = vor.u32 %v4043_v43, %v3685_v42  ;;  %v3626_v42 = vor.u32 %v4025_v36, %v3623_v37  ;;  %v3957_v43 = vld [vmem:[#allocation8 + $0x84] sm:$0xf]  ;;  %v3479_v47 = vld [vmem:[#allocation8 + $0x190] sm:$0xf0] }
  0xcc   : > { %2267 = vmatpush.bf16.msra.mxu0 %v3366_v61  ;;  %v4033_v61 = vld [vmem:[#allocation8 + $0x2e4] sm:$0xf]  ;;  %v3719_v0 = vld [vmem:[#allocation8 + $0x370] sm:$0xf0] }
  0xcd   : > { %2281 = vmatpush.bf16.msra.mxu1 %v3494_v62  ;;  %v3286_v62 = vor.u32 %v3943_v46, %v3285_v44  ;;  %v3351_v44 = vld [vmem:[#allocation8 + $0x90] sm:$0xf0]  ;;  %v3949_v3 = vld [vmem:[#allocation8 + $0x44] sm:$0xf] }
  0xce   : > { %2295 = vmatpush.bf16.msra.mxu2 %v3622_v63  ;;  %v3655_v63 = vld [vmem:[#allocation8 + $0x2f0] sm:$0xf0]  ;;  %v4005_v37 = vld [vmem:[#allocation8 + $0x204] sm:$0xf] }
  0xcf   : > { %2309 = vmatpush.bf16.msra.mxu3 %v3750_v2  ;;  %v3542_v2 = vor.u32 %v4007_v52, %v3541_v51  ;;  %v3735_v51 = vld [vmem:[#allocation8 + $0x390] sm:$0xf0]  ;;  %v3354_v52 = vor.u32 %v3957_v43, %v3351_v44  ;;  %v3972_v43 = vld [vmem:[#allocation8 + $0xf4] sm:$0xf0]  ;;  %v3533_v44 = vld [vmem:[#allocation8 + $0x1e8] sm:$0xf] }
  0xd0   : > { %2268 = vmatpush.bf16.msra.mxu0 %v3350_v7  ;;  %v3670_v7 = vor.u32 %v4039_v55, %v3669_v53  ;;  %v3953_v55 = vld [vmem:[#allocation8 + $0x64] sm:$0xf]  ;;  %v3319_v4 = vld [vmem:[#allocation8 + $0x50] sm:$0xf0] }
  0xd1   : > { %2282 = vmatpush.bf16.msra.mxu1 %v3478_v17  ;;  %v3402_v17 = vor.u32 %v3969_v56, %v3399_v57  ;;  %v3335_v56 = vld [vmem:[#allocation8 + $0x70] sm:$0xf0]  ;;  %v3985_v57 = vld [vmem:[#allocation8 + $0x164] sm:$0xf] }
  0xd2   : > { %2296 = vmatpush.bf16.msra.mxu2 %v3606_v8  ;;  %v3939_v8 = vld [vmem:[%s4645_s14 + $0xc] sm:$0xf0]  ;;  %v3338_v59 = vor.u32 %v3953_v55, %v3335_v56  ;;  %v3415_v36 = vld [vmem:[#allocation8 + $0x110] sm:$0xf0]  ;;  %v4719_v55 = vld [vmem:[#allocation10] sm:$0xf] }
  0xd3   : > { %2310 = vmatpush.bf16.msra.mxu3 %v3734_v13  ;;  %v3658_v13 = vor.u32 %v4033_v61, %v3655_v63  ;;  %v4701_v25 = vor.u32 %v3939_v8, %v3269_v10  ;;  %v4017_v61 = vld [vmem:[#allocation8 + $0x264] sm:$0xf]  ;;  %v3447_v10 = vld [vmem:[#allocation8 + $0x150] sm:$0xf0] }
  0xd4   : > { %2269 = vmatpush.bf16.msra.mxu0 %v3334_v20  ;;  %v4029_v20 = vld [vmem:[#allocation8 + $0x2c4] sm:$0xf] }
  0xd5   : > { %2283 = vmatpush.bf16.msra.mxu1 %v3462_v21  ;;  %v3639_v21 = vld [vmem:[#allocation8 + $0x2d0] sm:$0xf0]  ;;  %v4049_v63 = vld [vmem:[#allocation8 + $0x364] sm:$0xf] }
  0xd6   : > { %2297 = vmatpush.bf16.msra.mxu2 %v3590_v22  ;;  %v4699_v22 = vor.u32 %v3940_v6, %v3277_v5  ;;  %v3642_v30 = vor.u32 %v4029_v20, %v3639_v21  ;;  %v3981_v5 = vld [vmem:[#allocation8 + $0x144] sm:$0xf]  ;;  %v3722_v6 = vor.u32 %v4049_v63, %v3719_v0  ;;  %v3559_v21 = vld [vmem:[#allocation8 + $0x230] sm:$0xf0]  ;;  %v3517_v63 = vld [vmem:[#allocation8 + $0x1c8] sm:$0xf] }
  0xd7   : > { %2311 = vmatpush.bf16.msra.mxu3 %v3718_v26  ;;  %v4703_v26 = vor.u32 %v3938_v9, %v3279_v11  ;;  %v4045_v8 = vld [vmem:[#allocation8 + $0x344] sm:$0xf]  ;;  %v3703_v9 = vld [vmem:[#allocation8 + $0x350] sm:$0xf0]  ;;  %v3322_v11 = vor.u32 %v3949_v3, %v3319_v4  ;;  %v3773_v4 = vld [vmem:[#allocation8 + $0x3c8] sm:$0xf] }
  0xd8   : > { %2270 = vmatpush.bf16.msra.mxu0 %v3318_v32  ;;  %v3367_v32 = vld [vmem:[#allocation8 + $0xb0] sm:$0xf0]  ;;  %v4009_v20 = vld [vmem:[#allocation8 + $0x224] sm:$0xf] }
  0xd9   : > { %2284 = vmatpush.bf16.msra.mxu1 %v3446_v33  ;;  %v3993_v33 = vld [vmem:[#allocation8 + $0x1a4] sm:$0xf]  ;;  %v3370_v40 = vor.u32 %v3961_v31, %v3367_v32  ;;  %v3287_v32 = vld [vmem:[#allocation8 + $0x10] sm:$0xf0] }
  0xda   : > { %2298 = vmatpush.bf16.msra.mxu2 %v3574_v34  ;;  %v3770_v34 = vor.u32 %v4061_v23, %v3767_v24  ;;  %v3498_v41 = vor.u32 %v3993_v33, %v3495_v35  ;;  %v4041_v24 = vld [vmem:[#allocation8 + $0x324] sm:$0xf]  ;;  %v3434_v33 = vor.u32 %v3977_v16, %v3431_v19  ;;  %v4028_v16 = vld [vmem:[#allocation8 + $0x2b4] sm:$0xf0] }
  0xdb   : > { %2312 = vmatpush.bf16.msra.mxu3 %v3702_v38  ;;  %v4057_v38 = vld [vmem:[#allocation8 + $0x3a4] sm:$0xf]  ;;  %v4060_v19 = vld [vmem:[#allocation8 + $0x3b4] sm:$0xf0] }
  0xdc   : > { %2271 = vmatpush.bf16.msra.mxu0 %v3302_v45  ;;  %v3989_v45 = vld [vmem:[#allocation8 + $0x184] sm:$0xf]  ;;  %v3754_v46 = vor.u32 %v4057_v38, %v3751_v39  ;;  %v3543_v39 = vld [vmem:[#allocation8 + $0x210] sm:$0xf0] }
  0xdd   : > { %2285 = vmatpush.bf16.msra.mxu1 %v3430_v49  ;;  %v3607_v49 = vld [vmem:[#allocation8 + $0x290] sm:$0xf0]  ;;  %v3482_v53 = vor.u32 %v3989_v45, %v3479_v47  ;;  %v3941_v31 = vld [vmem:[#allocation8 + $0x4] sm:$0xf]  ;;  %v4004_v47 = vld [vmem:[#allocation8 + $0x1f4] sm:$0xf0] }
  0xde   : > { %2299 = vmatpush.bf16.msra.mxu2 %v3558_v50  ;;  %v4053_v50 = vld [vmem:[#allocation8 + $0x384] sm:$0xf] }
  0xdf   : > { %2313 = vmatpush.bf16.msra.mxu3 %v3686_v54  ;;  %v3610_v54 = vor.u32 %v4021_v48, %v3607_v49  ;;  %v3738_v58 = vor.u32 %v4053_v50, %v3735_v51  ;;  %v3973_v35 = vld [vmem:[#allocation8 + $0x104] sm:$0xf]  ;;  %v3661_v48 = vld [vmem:[#allocation8 + $0x2e8] sm:$0xf]  ;;  %v4036_v49 = vld [vmem:[#allocation8 + $0x2f4] sm:$0xf0] }
  0xe0   : > { %2272 = vmatpush.bf16.msra.mxu0 %v3286_v62  ;;  %v3591_v62 = vld [vmem:[#allocation8 + $0x270] sm:$0xf0]  ;;  %v3418_v51 = vor.u32 %v3973_v35, %v3415_v36  ;;  %v564_v35 = vperm.slane %v4719_v55, 1 }
  0xe1   : > { %2286 = vmatpush.bf16.msra.mxu1 %v3414_v1  ;;  %v3466_v1 = vor.u32 %v3985_v57, %v3463_v60  ;;  %v3662_v60 = vor.u32 %v4036_v49, %v3661_v48  ;;  %v3341_v49 = vld [vmem:[#allocation8 + $0x68] sm:$0xf] }
  0xe2   : > { %2300 = vmatpush.bf16.msra.mxu2 %v3542_v2  ;;  %v3594_v2 = vor.u32 %v4017_v61, %v3591_v62  ;;  %v3389_v61 = vld [vmem:[#allocation8 + $0xc8] sm:$0xf]  ;;  %v3968_v62 = vld [vmem:[#allocation8 + $0xd4] sm:$0xf0] }
  0xe3   : > { %2314 = vmatpush.bf16.msra.mxu3 %v3670_v7  ;;  %2273 = vmatmul.bf16.vlgmr.msra.gmra.mxu0 %v4701_v25  ;;  %v4013_v7 = vld [vmem:[#allocation8 + $0x244] sm:$0xf]  ;;  %v4711_v23 = vpop.f32.mrf.mxu0 }
  0xe4   : > { %2321 = vmatpush.bf16.msrb.mxu0 %v3402_v17  ;;  %2287 = vmatmul.bf16.vlgmr.msra.gmra.mxu1 %v4705_v28  ;;  %v3575_v17 = vld [vmem:[#allocation8 + $0x250] sm:$0xf0] }
  0xe5   : > { %2335 = vmatpush.bf16.msrb.mxu1 %v3530_v12  ;;  %2301 = vmatmul.bf16.vlgmr.msra.gmra.mxu2 %v4699_v22  ;;  %v3450_v12 = vor.u32 %v3981_v5, %v3447_v10  ;;  %v4064_v5 = vld [vmem:[#allocation8 + $0x3d4] sm:$0xf0]  ;;  %v563_v10 = vperm.slane %v4719_v55, 0 }
  0xe6   : > { %2349 = vmatpush.bf16.msrb.mxu2 %v3658_v13  ;;  %2315 = vmatmul.bf16.vlgmr.msra.gmra.mxu3 %v4703_v26  ;;  %v3578_v13 = vor.u32 %v4013_v7, %v3575_v17  ;;  %v3390_v7 = vor.u32 %v3968_v62, %v3389_v61 }
  0xe7   : > { %2363 = vmatpush.bf16.msrb.mxu3 %v3786_v18  ;;  %v3706_v18 = vor.u32 %v4045_v8, %v3703_v9  ;;  %v3373_v9 = vld [vmem:[#allocation8 + $0xa8] sm:$0xf] }
  0xe8   : > { %2322 = vmatpush.bf16.msrb.mxu0 %v3386_v27  ;;  %v3687_v27 = vld [vmem:[#allocation8 + $0x330] sm:$0xf0]  ;;  %v4715_v45 = vpop.f32.mrf.mxu2 }
  0xe9   : > { %2336 = vmatpush.bf16.msrb.mxu1 %v3514_v29  ;;  %v4713_v29 = vpop.f32.mrf.mxu1  ;;  %v3690_v38 = vor.u32 %v4041_v24, %v3687_v27 }
  0xea   : > { %2350 = vmatpush.bf16.msrb.mxu2 %v3642_v30  ;;  %v3306_v30 = vor.u32 %v3945_v14, %v3303_v15  ;;  %v3996_v14 = vld [vmem:[#allocation8 + $0x1b4] sm:$0xf0]  ;;  %v3629_v15 = vld [vmem:[#allocation8 + $0x2a8] sm:$0xf] }
  0xeb   : > { %2364 = vmatpush.bf16.msrb.mxu3 %v3770_v34  ;;  %v3562_v34 = vor.u32 %v4009_v20, %v3559_v21  ;;  %v4717_v50 = vpop.f32.mrf.mxu3  ;;  %v4721_v3 = vpop.f32.mrf.mxu0  ;;  %v1241_v21 = vadd.f32 %v4711_v23, %v563_v10  ;;  %v4024_v23 = vld [vmem:[#allocation8 + $0x294] sm:$0xf0] }
  0xec   : > { %2323 = vmatpush.bf16.msrb.mxu0 %v3370_v40  ;;  %v4037_v40 = vld [vmem:[#allocation8 + $0x304] sm:$0xf]  ;;  %v1243_v62 = vadd.f32 %v4721_v3, %v563_v10 }
  0xed   : > { %2337 = vmatpush.bf16.msrb.mxu1 %v3498_v41  ;;  %v3671_v41 = vld [vmem:[#allocation8 + $0x310] sm:$0xf0] }
  0xee   : > { %2351 = vmatpush.bf16.msrb.mxu2 %v3626_v42  ;;  %v3405_v42 = vld [vmem:[#allocation8 + $0xe8] sm:$0xf]  ;;  %v3674_v56 = vor.u32 %v4037_v40, %v3671_v41  ;;  %v4056_v40 = vld [vmem:[#allocation8 + $0x394] sm:$0xf0]  ;;  %v1255_v41 = vadd.f32 %v4713_v29, %v1241_v21 }
  0xef   : > { %2365 = vmatpush.bf16.msrb.mxu3 %v3754_v46  ;;  %v3290_v46 = vor.u32 %v3941_v31, %v3287_v32  ;;  %v3406_v57 = vor.u32 %v3972_v43, %v3405_v42  ;;  %v3630_v32 = vor.u32 %v4028_v16, %v3629_v15  ;;  %v4052_v29 = vld [vmem:[#allocation8 + $0x374] sm:$0xf0] }
  0xf0   : > { %2324 = vmatpush.bf16.msrb.mxu0 %v3354_v52  ;;  %v3546_v52 = vor.u32 %v4005_v37, %v3543_v39  ;;  %v4729_v20 = vpop.f32.mrf.mxu2  ;;  %v3992_v37 = vld [vmem:[#allocation8 + $0x194] sm:$0xf0]  ;;  %v3741_v39 = vld [vmem:[#allocation8 + $0x388] sm:$0xf]  ;;  %v1269_v61 = vadd.f32 %v4715_v45, %v1255_v41 }
  0xf1   : > { %2338 = vmatpush.bf16.msrb.mxu1 %v3482_v53  ;;  %v3789_v53 = vld [vmem:[#allocation8 + $0x3e8] sm:$0xf]  ;;  %v3944_v41 = vld [vmem:[#allocation8 + $0x14] sm:$0xf0] }
  0xf2   : > { %2352 = vmatpush.bf16.msrb.mxu2 %v3610_v54  ;;  %v4068_v54 = vld [vmem:[#allocation8 + $0x3f4] sm:$0xf0]  ;;  %v3581_v45 = vld [vmem:[#allocation8 + $0x248] sm:$0xf]  ;;  %v1283_v3 = vadd.f32 %v4717_v50, %v1269_v61 }
  0xf3   : > { %2366 = vmatpush.bf16.msrb.mxu3 %v3738_v58  ;;  %v3534_v58 = vor.u32 %v4004_v47, %v3533_v44  ;;  %v3790_v0 = vor.u32 %v4068_v54, %v3789_v53  ;;  %v4735_v27 = vpop.f32.mrf.mxu3  ;;  %v3742_v53 = vor.u32 %v4056_v40, %v3741_v39  ;;  %v3988_v54 = vld [vmem:[#allocation8 + $0x174] sm:$0xf0]  ;;  %v3293_v40 = vld [vmem:[#allocation8 + $0x8] sm:$0xf] }
  0xf4   : > { %2325 = vmatpush.bf16.msrb.mxu0 %v3338_v59  ;;  %v4000_v59 = vld [vmem:[#allocation8 + $0x1d4] sm:$0xf0]  ;;  %v3294_v61 = vor.u32 %v3944_v41, %v3293_v40  ;;  %v3487_v41 = vld [vmem:[#allocation8 + $0x198] sm:$0xf0] }
  0xf5   : > { %2339 = vmatpush.bf16.msrb.mxu1 %v3466_v1  ;;  %v3645_v1 = vld [vmem:[#allocation8 + $0x2c8] sm:$0xf]  ;;  %v3518_v17 = vor.u32 %v4000_v59, %v3517_v63  ;;  %v3980_v50 = vld [vmem:[#allocation8 + $0x134] sm:$0xf0] }
  0xf6   : > { %2353 = vmatpush.bf16.msrb.mxu2 %v3594_v2  ;;  %v4032_v2 = vld [vmem:[#allocation8 + $0x2d4] sm:$0xf0] }
  0xf7   : > { %2367 = vmatpush.bf16.msrb.mxu3 %v3722_v6  ;;  %v4723_v6 = vpop.f32.mrf.mxu1  ;;  %v3646_v8 = vor.u32 %v4032_v2, %v3645_v1  ;;  %v3325_v2 = vld [vmem:[#allocation8 + $0x48] sm:$0xf] }
  0xf8   : > { %2326 = vmatpush.bf16.msrb.mxu0 %v3322_v11  ;;  %v3964_v11 = vld [vmem:[#allocation8 + $0xb4] sm:$0xf0]  ;;  %v1257_v10 = vadd.f32 %v4723_v6, %v1243_v62  ;;  %v3535_v62 = vld [vmem:[#allocation8 + $0x1f8] sm:$0xf0] }
  0xf9   : > { %2340 = vmatpush.bf16.msrb.mxu1 %v3450_v12  ;;  %v3501_v12 = vld [vmem:[#allocation8 + $0x1a8] sm:$0xf]  ;;  %v3374_v24 = vor.u32 %v3964_v11, %v3373_v9  ;;  %v3984_v9 = vld [vmem:[#allocation8 + $0x154] sm:$0xf0] }
  0xfa   : > { %2354 = vmatpush.bf16.msrb.mxu2 %v3578_v13  ;;  %v3774_v13 = vor.u32 %v4064_v5, %v3773_v4  ;;  %v3502_v31 = vor.u32 %v3996_v14, %v3501_v12  ;;  %v3952_v4 = vld [vmem:[#allocation8 + $0x54] sm:$0xf0]  ;;  %v3453_v5 = vld [vmem:[#allocation8 + $0x148] sm:$0xf]  ;;  %v1271_v39 = vadd.f32 %v4729_v20, %v1257_v10  ;;  %v3647_v10 = vld [vmem:[#allocation8 + $0x2d8] sm:$0xf0] }
  0xfb   : > { %2368 = vmatpush.bf16.msrb.mxu3 %v3706_v18  ;;  %v3757_v18 = vld [vmem:[#allocation8 + $0x3a8] sm:$0xf]  ;;  %v4016_v11 = vld [vmem:[#allocation8 + $0x254] sm:$0xf0]  ;;  %v3326_v15 = vor.u32 %v3952_v4, %v3325_v2  ;;  %v4066_v2 = vld [vmem:[#allocation8 + $0x3ec] sm:$0xf] }
  0xfc   : > { %2327 = vmatpush.bf16.msrb.mxu0 %v3306_v30  ;;  %v3357_v30 = vld [vmem:[#allocation8 + $0x88] sm:$0xf]  ;;  %v3758_v36 = vor.u32 %v4060_v19, %v3757_v18  ;;  %v3454_v18 = vor.u32 %v3984_v9, %v3453_v5  ;;  %v3582_v19 = vor.u32 %v4016_v11, %v3581_v45  ;;  %v4012_v6 = vld [vmem:[#allocation8 + $0x234] sm:$0xf0]  ;;  %v3791_v4 = vld [vmem:[#allocation8 + $0x3f8] sm:$0xf0] }
  0xfd   : > { %2341 = vmatpush.bf16.msrb.mxu1 %v3434_v33  ;;  %v3960_v33 = vld [vmem:[#allocation8 + $0x94] sm:$0xf0]  ;;  %v3709_v12 = vld [vmem:[#allocation8 + $0x348] sm:$0xf]  ;;  %v3391_v45 = vld [vmem:[#allocation8 + $0xd8] sm:$0xf0] }
  0xfe   : > { %2355 = vmatpush.bf16.msrb.mxu2 %v3562_v34  ;;  %v3485_v34 = vld [vmem:[#allocation8 + $0x188] sm:$0xf]  ;;  %v3358_v42 = vor.u32 %v3960_v33, %v3357_v30  ;;  %v3998_v11 = vld [vmem:[#allocation8 + $0x1cc] sm:$0xf] }
  0xff   : > { %2369 = vmatpush.bf16.msrb.mxu3 %v3690_v38  ;;  %v3613_v38 = vld [vmem:[#allocation8 + $0x288] sm:$0xf]  ;;  %v3486_v44 = vor.u32 %v3992_v37, %v3485_v34 }
 0x100   : > { %2328 = vmatpush.bf16.msrb.mxu0 %v3290_v46  ;;  %v1296_v43 = vpop.f32.mrf.mxu0  ;;  %v3614_v46 = vor.u32 %v4024_v23, %v3613_v38  ;;  %v3309_v30 = vld [vmem:[#allocation8 + $0x28] sm:$0xf]  ;;  %v4044_v23 = vld [vmem:[#allocation8 + $0x334] sm:$0xf0] }
 0x101   : > { %2342 = vmatpush.bf16.msrb.mxu1 %v3418_v51  ;;  %v1297_v47 = vadd.f32 %v1296_v43, %v564_v35  ;;  %v1310_v48 = vpop.f32.mrf.mxu1  ;;  %v3956_v51 = vld [vmem:[#allocation8 + $0x74] sm:$0xf0]  ;;  %v3693_v38 = vld [vmem:[#allocation8 + $0x328] sm:$0xf] }
 0x102   : > { %2356 = vmatpush.bf16.msrb.mxu2 %v3546_v52  ;;  %v3469_v52 = vld [vmem:[#allocation8 + $0x168] sm:$0xf]  ;;  %v3342_v63 = vor.u32 %v3956_v51, %v3341_v49  ;;  %v3694_v49 = vor.u32 %v4044_v23, %v3693_v38  ;;  %v3958_v23 = vld [vmem:[#allocation8 + $0x8c] sm:$0xf] }
 0x103   : > { %2370 = vmatpush.bf16.msrb.mxu3 %v3674_v56  ;;  %2329 = vmatmul.bf16.vlgmr.msrb.gmra.mxu0 %v4701_v25  ;;  %v3597_v56 = vld [vmem:[#allocation8 + $0x268] sm:$0xf] }
 0x104   : > { %2377 = vmatpush.bf16.msra.mxu0 %v3406_v57  ;;  %2343 = vmatmul.bf16.vlgmr.msrb.gmra.mxu1 %v4705_v28  ;;  %v4020_v57 = vld [vmem:[#allocation8 + $0x274] sm:$0xf0] }
 0x105   : > { %2391 = vmatpush.bf16.msra.mxu1 %v3534_v58  ;;  %2357 = vmatmul.bf16.vlgmr.msrb.gmra.mxu2 %v4699_v22  ;;  %v1311_v58 = vadd.f32 %v1310_v48, %v1297_v47  ;;  %v3598_v59 = vor.u32 %v4020_v57, %v3597_v56  ;;  %v3976_v47 = vld [vmem:[#allocation8 + $0x114] sm:$0xf0]  ;;  %v3549_v48 = vld [vmem:[#allocation8 + $0x208] sm:$0xf]  ;;  %v3970_v56 = vld [vmem:[#allocation8 + $0xec] sm:$0xf] }
 0x106   : > { %2405 = vmatpush.bf16.msra.mxu2 %v3662_v60  ;;  %2371 = vmatmul.bf16.vlgmr.msrb.gmra.mxu3 %v4703_v26  ;;  %v3725_v60 = vld [vmem:[#allocation8 + $0x368] sm:$0xf]  ;;  %v3407_v57 = vld [vmem:[#allocation8 + $0xf8] sm:$0xf0] }
 0x107   : > { %2419 = vmatpush.bf16.msra.mxu3 %v3790_v0  ;;  %v3470_v0 = vor.u32 %v3988_v54, %v3469_v52  ;;  %v4008_v52 = vld [vmem:[#allocation8 + $0x214] sm:$0xf0] }
 0x108   : > { %2378 = vmatpush.bf16.msra.mxu0 %v3390_v7  ;;  %v1324_v1 = vpop.f32.mrf.mxu2  ;;  %v3726_v7 = vor.u32 %v4052_v29, %v3725_v60  ;;  %v1298_v16 = vpop.f32.mrf.mxu0  ;;  %v4040_v54 = vld [vmem:[#allocation8 + $0x314] sm:$0xf0]  ;;  %v1285_v60 = vadd.f32 %v4735_v27, %v1271_v39  ;;  %v3359_v39 = vld [vmem:[#allocation8 + $0x98] sm:$0xf0] }
 0x109   : > { %2392 = vmatpush.bf16.msra.mxu1 %v3518_v17  ;;  %v1325_v17 = vadd.f32 %v1324_v1, %v1311_v58  ;;  %v1299_v21 = vadd.f32 %v1298_v16, %v564_v35  ;;  %v4002_v58 = vld [vmem:[#allocation8 + $0x1ec] sm:$0xf]  ;;  %v3550_v1 = vor.u32 %v4008_v52, %v3549_v48 }
 0x10a   : > { %2406 = vmatpush.bf16.msra.mxu2 %v3646_v8  ;;  %v1338_v8 = vpop.f32.mrf.mxu3  ;;  %v3538_v9 = vor.u32 %v4002_v58, %v3535_v62  ;;  %v3986_v52 = vld [vmem:[#allocation8 + $0x16c] sm:$0xf] }
 0x10b   : > { %2420 = vmatpush.bf16.msra.mxu3 %v3774_v13  ;;  %v4048_v13 = vld [vmem:[#allocation8 + $0x354] sm:$0xf0]  ;;  %v1339_v14 = vadd.f32 %v1338_v8, %v1325_v17  ;;  %v3410_v17 = vor.u32 %v3970_v56, %v3407_v57  ;;  %v3966_v8 = vld [vmem:[#allocation8 + $0xcc] sm:$0xf]  ;;  %v3599_v57 = vld [vmem:[#allocation8 + $0x278] sm:$0xf0] }
 0x10c   : > { %2379 = vmatpush.bf16.msra.mxu0 %v3374_v24  ;;  %v1312_v24 = vpop.f32.mrf.mxu1  ;;  %v3710_v34 = vor.u32 %v4048_v13, %v3709_v12  ;;  %v3519_v12 = vld [vmem:[#allocation8 + $0x1d8] sm:$0xf0]  ;;  %v3794_v13 = vor.u32 %v4066_v2, %v3791_v4  ;;  %v3394_v16 = vor.u32 %v3966_v8, %v3391_v45  ;;  %v4018_v56 = vld [vmem:[#allocation8 + $0x26c] sm:$0xf] }
 0x10d   : > { %2393 = vmatpush.bf16.msra.mxu1 %v3502_v31  ;;  %v3948_v31 = vld [vmem:[#allocation8 + $0x34] sm:$0xf0]  ;;  %v1455_v33 = vpack.c.bf16 %v1339_v14, %v1283_v3  ;;  %v1313_v37 = vadd.f32 %v1312_v24, %v1299_v21  ;;  %v4030_v3 = vld [vmem:[#allocation8 + $0x2cc] sm:$0xf]  ;;  %v3375_v24 = vld [vmem:[#allocation8 + $0xb8] sm:$0xf0]  ;;  %v3602_v62 = vor.u32 %v4018_v56, %v3599_v57 }
 0x10e   : > { %2407 = vmatpush.bf16.msra.mxu2 %v3630_v32  ;;  %v3437_v32 = vld [vmem:[#allocation8 + $0x128] sm:$0xf]  ;;  %v3310_v35 = vor.u32 %v3948_v31, %v3309_v30  ;;  %v4062_v14 = vld [vmem:[#allocation8 + $0x3cc] sm:$0xf]  ;;  %v3455_v2 = vld [vmem:[#allocation8 + $0x158] sm:$0xf0] }
 0x10f   : > { %2421 = vmatpush.bf16.msra.mxu3 %v3758_v36  ;;  %v3565_v36 = vld [vmem:[#allocation8 + $0x228] sm:$0xf]  ;;  %1459 = vst [vmem:[%s4747_s30] sm:$0xff] %v1455_v33  ;;  %v3962_v21 = vld [vmem:[#allocation8 + $0xac] sm:$0xf] }
 0x110   : > { %2380 = vmatpush.bf16.msra.mxu0 %v3358_v42  ;;  %v3438_v42 = vor.u32 %v3980_v50, %v3437_v32  ;;  %v3566_v43 = vor.u32 %v4012_v6, %v3565_v36  ;;  %v3994_v30 = vld [vmem:[#allocation8 + $0x1ac] sm:$0xf]  ;;  %v3503_v32 = vld [vmem:[#allocation8 + $0x1b8] sm:$0xf0]  ;;  %v3378_v6 = vor.u32 %v3962_v21, %v3375_v24 }
 0x111   : > { %2394 = vmatpush.bf16.msra.mxu1 %v3486_v44  ;;  %v1326_v44 = vpop.f32.mrf.mxu2  ;;  %v4026_v33 = vld [vmem:[#allocation8 + $0x2ac] sm:$0xf]  ;;  %v3759_v36 = vld [vmem:[#allocation8 + $0x3b8] sm:$0xf0] }
 0x112   : > { %2408 = vmatpush.bf16.msra.mxu2 %v3614_v46  ;;  %v3421_v46 = vld [vmem:[#allocation8 + $0x108] sm:$0xf]  ;;  %v1327_v51 = vadd.f32 %v1326_v44, %v1313_v37  ;;  %v1340_v20 = vpop.f32.mrf.mxu3  ;;  %v4058_v50 = vld [vmem:[#allocation8 + $0x3ac] sm:$0xf]  ;;  %v3506_v37 = vor.u32 %v3994_v30, %v3503_v32  ;;  %v3295_v32 = vld [vmem:[#allocation8 + $0x18] sm:$0xf0] }
 0x113   : > { %2422 = vmatpush.bf16.msra.mxu3 %v3742_v53  ;;  %v3677_v53 = vld [vmem:[#allocation8 + $0x308] sm:$0xf]  ;;  %v3762_v40 = vor.u32 %v4058_v50, %v3759_v36  ;;  %v4054_v44 = vld [vmem:[#allocation8 + $0x38c] sm:$0xf]  ;;  %v3423_v50 = vld [vmem:[#allocation8 + $0x118] sm:$0xf0] }
 0x114   : > { %2381 = vmatpush.bf16.msra.mxu0 %v3342_v63  ;;  %v1341_v29 = vadd.f32 %v1340_v20, %v1327_v51  ;;  %v4034_v63 = vld [vmem:[#allocation8 + $0x2ec] sm:$0xf]  ;;  %v3343_v20 = vld [vmem:[#allocation8 + $0x78] sm:$0xf0] }
 0x115   : > { %2395 = vmatpush.bf16.msra.mxu1 %v3470_v0  ;;  %v3663_v0 = vld [vmem:[#allocation8 + $0x2f8] sm:$0xf0]  ;;  %v3954_v51 = vld [vmem:[#allocation8 + $0x6c] sm:$0xf] }
 0x116   : > { %2409 = vmatpush.bf16.msra.mxu2 %v3598_v59  ;;  %v3422_v59 = vor.u32 %v3976_v47, %v3421_v46  ;;  %v1457_v5 = vpack.c.bf16 %v1341_v29, %v1285_v60  ;;  %v3666_v27 = vor.u32 %v4034_v63, %v3663_v0  ;;  %v3743_v46 = vld [vmem:[#allocation8 + $0x398] sm:$0xf0]  ;;  %v3362_v47 = vor.u32 %v3958_v23, %v3359_v39  ;;  %v4050_v58 = vld [vmem:[#allocation8 + $0x36c] sm:$0xf] }
 0x117   : > { %2423 = vmatpush.bf16.msra.mxu3 %v3726_v7  ;;  %v3678_v7 = vor.u32 %v4040_v54, %v3677_v53  ;;  %v3746_v53 = vor.u32 %v4054_v44, %v3743_v46  ;;  %v3471_v54 = vld [vmem:[#allocation8 + $0x178] sm:$0xf0]  ;;  %v3346_v29 = vor.u32 %v3954_v51, %v3343_v20  ;;  %v3950_v63 = vld [vmem:[#allocation8 + $0x4c] sm:$0xf]  ;;  %v565_v46 = vperm.slane %v4719_v55, 2 }
 0x118   : > { %2382 = vmatpush.bf16.msra.mxu0 %v3326_v15  ;;  %1461 = vst [vmem:[%s4747_s30 + $0x10] sm:$0xff] %v1457_v5  ;;  %v3775_v15 = vld [vmem:[#allocation8 + $0x3d8] sm:$0xf0]  ;;  %v4014_v4 = vld [vmem:[#allocation8 + $0x24c] sm:$0xf]  ;;  %v566_v51 = vperm.slane %v4719_v55, 3 }
 0x119   : > { %2396 = vmatpush.bf16.msra.mxu1 %v3454_v18  ;;  %v3522_v18 = vor.u32 %v3998_v11, %v3519_v12  ;;  %v3778_v31 = vor.u32 %v4062_v14, %v3775_v15  ;;  %v3727_v60 = vld [vmem:[#allocation8 + $0x378] sm:$0xf0]  ;;  %v3946_v45 = vld [vmem:[#allocation8 + $0x2c] sm:$0xf] }
 0x11a   : > { %2410 = vmatpush.bf16.msra.mxu2 %v3582_v19  ;;  %v3650_v19 = vor.u32 %v4030_v3, %v3647_v10  ;;  %v3327_v0 = vld [vmem:[#allocation8 + $0x58] sm:$0xf0]  ;;  %v3978_v12 = vld [vmem:[#allocation8 + $0x12c] sm:$0xf] }
 0x11b   : > { %2424 = vmatpush.bf16.msra.mxu3 %v3710_v34  ;;  %v3631_v34 = vld [vmem:[#allocation8 + $0x2b8] sm:$0xf0]  ;;  %v3330_v8 = vor.u32 %v3950_v63, %v3327_v0  ;;  %v4010_v10 = vld [vmem:[#allocation8 + $0x22c] sm:$0xf] }
 0x11c   : > { %2383 = vmatpush.bf16.msra.mxu0 %v3310_v35  ;;  %v3634_v38 = vor.u32 %v4026_v33, %v3631_v34  ;;  %v3990_v35 = vld [vmem:[#allocation8 + $0x18c] sm:$0xf]  ;;  %v3583_v5 = vld [vmem:[#allocation8 + $0x258] sm:$0xf0] }
 0x11d   : > { %2397 = vmatpush.bf16.msra.mxu1 %v3438_v42  ;;  %v4022_v42 = vld [vmem:[#allocation8 + $0x28c] sm:$0xf]  ;;  %v3490_v48 = vor.u32 %v3990_v35, %v3487_v41  ;;  %v3311_v11 = vld [vmem:[#allocation8 + $0x38] sm:$0xf0] }
 0x11e   : > { %2411 = vmatpush.bf16.msra.mxu2 %v3566_v43  ;;  %v3615_v43 = vld [vmem:[#allocation8 + $0x298] sm:$0xf0]  ;;  %v3314_v21 = vor.u32 %v3946_v45, %v3311_v11  ;;  %v3974_v33 = vld [vmem:[#allocation8 + $0x10c] sm:$0xf] }
 0x11f   : > { %2425 = vmatpush.bf16.msra.mxu3 %v3694_v49  ;;  %v3618_v49 = vor.u32 %v4022_v42, %v3615_v43  ;;  %v3439_v3 = vld [vmem:[#allocation8 + $0x138] sm:$0xf0]  ;;  %v4006_v36 = vld [vmem:[#allocation8 + $0x20c] sm:$0xf] }
 0x120   : > { %2384 = vmatpush.bf16.msra.mxu0 %v3294_v61  ;;  %v3474_v61 = vor.u32 %v3986_v52, %v3471_v54  ;;  %v3567_v14 = vld [vmem:[#allocation8 + $0x238] sm:$0xf0]  ;;  %v1352_v15 = vpop.f32.mrf.mxu0  ;;  %v3442_v24 = vor.u32 %v3978_v12, %v3439_v3 }
 0x121   : > { %2398 = vmatpush.bf16.msra.mxu1 %v3422_v59  ;;  %v3982_v59 = vld [vmem:[#allocation8 + $0x14c] sm:$0xf]  ;;  %v3570_v30 = vor.u32 %v4010_v10, %v3567_v14 }
 0x122   : > { %2412 = vmatpush.bf16.msra.mxu2 %v3550_v1  ;;  %v3730_v1 = vor.u32 %v4050_v58, %v3727_v60 }
 0x123   : > { %2426 = vmatpush.bf16.msra.mxu3 %v3678_v7  ;;  %2385 = vmatmul.bf16.vlgmr.msra.gmra.mxu0 %v4701_v25  ;;  %v4046_v7 = vld [vmem:[#allocation8 + $0x34c] sm:$0xf] }
 0x124   : > { %2433 = vmatpush.bf16.msrb.mxu0 %v3410_v17  ;;  %2399 = vmatmul.bf16.vlgmr.msra.gmra.mxu1 %v4705_v28  ;;  %v3711_v17 = vld [vmem:[#allocation8 + $0x358] sm:$0xf0] }
 0x125   : > { %2447 = vmatpush.bf16.msrb.mxu1 %v3538_v9  ;;  %2413 = vmatmul.bf16.vlgmr.msra.gmra.mxu2 %v4699_v22  ;;  %v3458_v9 = vor.u32 %v3982_v59, %v3455_v2 }
 0x126   : > { %2461 = vmatpush.bf16.msrb.mxu2 %v3666_v27  ;;  %2427 = vmatmul.bf16.vlgmr.msra.gmra.mxu3 %v4703_v26  ;;  %v3586_v27 = vor.u32 %v4014_v4, %v3583_v5 }
 0x127   : > { %2475 = vmatpush.bf16.msrb.mxu3 %v3794_v13  ;;  %v3714_v13 = vor.u32 %v4046_v7, %v3711_v17 }
 0x128   : > { %2434 = vmatpush.bf16.msrb.mxu0 %v3394_v16  ;;  %v4042_v16 = vld [vmem:[#allocation8 + $0x32c] sm:$0xf]  ;;  %v1380_v23 = vpop.f32.mrf.mxu2  ;;  %v1354_v43 = vpop.f32.mrf.mxu0 }
 0x129   : > { %2448 = vmatpush.bf16.msrb.mxu1 %v3522_v18  ;;  %v3695_v18 = vld [vmem:[#allocation8 + $0x338] sm:$0xf0]  ;;  %v1394_v35 = vpop.f32.mrf.mxu3 }
 0x12a   : > { %2462 = vmatpush.bf16.msrb.mxu2 %v3650_v19  ;;  %v1366_v19 = vpop.f32.mrf.mxu1  ;;  %v3698_v34 = vor.u32 %v4042_v16, %v3695_v18 }
 0x12b   : > { %2476 = vmatpush.bf16.msrb.mxu3 %v3778_v31  ;;  %v3942_v31 = vld [vmem:[#allocation8 + $0xc] sm:$0xf] }
 0x12c   : > { %2435 = vmatpush.bf16.msrb.mxu0 %v3378_v6  ;;  %v3551_v6 = vld [vmem:[#allocation8 + $0x218] sm:$0xf0]  ;;  %v3298_v39 = vor.u32 %v3942_v31, %v3295_v32 }
 0x12d   : > { %2449 = vmatpush.bf16.msrb.mxu1 %v3506_v37  ;;  %v4038_v37 = vld [vmem:[#allocation8 + $0x30c] sm:$0xf]  ;;  %v3554_v41 = vor.u32 %v4006_v36, %v3551_v6 }
 0x12e   : > { %2463 = vmatpush.bf16.msrb.mxu2 %v3634_v38  ;;  %v3679_v38 = vld [vmem:[#allocation8 + $0x318] sm:$0xf0] }
 0x12f   : > { %2477 = vmatpush.bf16.msrb.mxu3 %v3762_v40  ;;  %v3426_v40 = vor.u32 %v3974_v33, %v3423_v50  ;;  %v3682_v42 = vor.u32 %v4038_v37, %v3679_v38 }
 0x130   : > { %2436 = vmatpush.bf16.msrb.mxu0 %v3362_v47  ;;  %v1382_v47 = vpop.f32.mrf.mxu2 }
 0x131   : > { %2450 = vmatpush.bf16.msrb.mxu1 %v3490_v48  ;;  %v1353_v48 = vadd.f32 %v1352_v15, %v565_v46 }
 0x132   : > { %2464 = vmatpush.bf16.msrb.mxu2 %v3618_v49  ;;  %v1368_v44 = vpop.f32.mrf.mxu1  ;;  %v1396_v49 = vpop.f32.mrf.mxu3 }
 0x133   : > { %2478 = vmatpush.bf16.msrb.mxu3 %v3746_v53  ;;  %v1367_v20 = vadd.f32 %v1366_v19, %v1353_v48 }
 0x134   : > { %2437 = vmatpush.bf16.msrb.mxu0 %v3346_v29 }
 0x135   : > { %2451 = vmatpush.bf16.msrb.mxu1 %v3474_v61  ;;  %v1381_v57 = vadd.f32 %v1380_v23, %v1367_v20 }
 0x136   : > { %2465 = vmatpush.bf16.msrb.mxu2 %v3602_v62 }
 0x137   : > { %2479 = vmatpush.bf16.msrb.mxu3 %v3730_v1 }
 0x138   : > { %2438 = vmatpush.bf16.msrb.mxu0 %v3330_v8 }
 0x139   : > { %2452 = vmatpush.bf16.msrb.mxu1 %v3458_v9 }
 0x13a   : > { %2466 = vmatpush.bf16.msrb.mxu2 %v3586_v27 }
 0x13b   : > { %2480 = vmatpush.bf16.msrb.mxu3 %v3714_v13 }
 0x13c   : > { %2439 = vmatpush.bf16.msrb.mxu0 %v3314_v21 }
 0x13d   : > { %2453 = vmatpush.bf16.msrb.mxu1 %v3442_v24 }
 0x13e   : > { %2467 = vmatpush.bf16.msrb.mxu2 %v3570_v30 }
 0x13f   : > { %2481 = vmatpush.bf16.msrb.mxu3 %v3698_v34 }
 0x140   : > { %2440 = vmatpush.bf16.msrb.mxu0 %v3298_v39  ;;  %v1408_v52 = vpop.f32.mrf.mxu0 }
 0x141   : > { %2454 = vmatpush.bf16.msrb.mxu1 %v3426_v40  ;;  %v1409_v53 = vadd.f32 %v1408_v52, %v566_v51  ;;  %v1422_v54 = vpop.f32.mrf.mxu1 }
 0x142   : > { %2468 = vmatpush.bf16.msrb.mxu2 %v3554_v41 }
 0x143   : > { %2482 = vmatpush.bf16.msrb.mxu3 %v3682_v42  ;;  %2441 = vmatmul.bf16.vlgmr.msrb.gmra.mxu0 %v4701_v25  ;;  %v1423_v56 = vadd.f32 %v1422_v54, %v1409_v53  ;;  %v1355_v25 = vadd.f32 %v1354_v43, %v565_v46 }
 0x144   : > { %2455 = vmatmul.bf16.vlgmr.msrb.gmra.mxu1 %v4705_v28 }
 0x145   : > { %2469 = vmatmul.bf16.vlgmr.msrb.gmra.mxu2 %v4699_v22  ;;  %v1369_v60 = vadd.f32 %v1368_v44, %v1355_v25 }
 0x146   : > { %2483 = vmatmul.bf16.vlgmr.msrb.gmra.mxu3 %v4703_v26  ;;  %v1395_v26 = vadd.f32 %v1394_v35, %v1381_v57 }
 0x147   : > { %v1383_v59 = vadd.f32 %v1382_v47, %v1369_v60 }
 0x148   : > { %v1436_v28 = vpop.f32.mrf.mxu2  ;;  %v1410_v61 = vpop.f32.mrf.mxu0 }
 0x149   : > { %v1437_v22 = vadd.f32 %v1436_v28, %v1423_v56  ;;  %v1450_v58 = vpop.f32.mrf.mxu3  ;;  %v1411_v62 = vadd.f32 %v1410_v61, %v566_v51  ;;  %v1424_v55 = vpop.f32.mrf.mxu1  ;;  %v1397_v5 = vadd.f32 %v1396_v49, %v1383_v59 }
 0x14b   : > { %v1451_v29 = vadd.f32 %v1450_v58, %v1437_v22  ;;  %v1425_v0 = vadd.f32 %v1424_v55, %v1411_v62 }
 0x14d   : > { %v1456_v63 = vpack.c.bf16 %v1451_v29, %v1395_v26 }
 0x14f   : > { %1460 = vst [vmem:[%s4747_s30 + $0x8] sm:$0xff] %v1456_v63 }
 0x150   : > { %v1438_v1 = vpop.f32.mrf.mxu2 }
 0x151   : > { %v1439_v2 = vadd.f32 %v1438_v1, %v1425_v0  ;;  %v1452_v4 = vpop.f32.mrf.mxu3 }
 0x153   : > { %v1453_v7 = vadd.f32 %v1452_v4, %v1439_v2 }
 0x155   : > { %v1458_v17 = vpack.c.bf16 %v1453_v7, %v1397_v5 }
 0x157   : > { %1462 = vst [vmem:[%s4747_s30 + $0x18] sm:$0xff] %v1458_v17 }
 0x158   : > { %4355 = shalt.err (!%p4352_p0)
}
 0x159   : > { %s4461_s28 = smov 256   ;;  %s4462_s10 = smov 16   ;;  %v1595_v11 = vld [vmem:[%s4843_s5] sm:$0xf] }
 0x15a   : > { %4087 = dma.vmem_to_hbm [thread:$0]  (%p4600_p5), %s2519_s12, 512, %s2521_s15, %s2498_s17, %s4461_s28, %s4461_s28, %s4462_s10   ;;  %v1597_v3 = vperm.slane %v1595_v11, 0  ;;  %v1598_v16 = vperm.slane %v1595_v11, 1  ;;  %v1599_v54 = vperm.slane %v1595_v11, 2  ;;  %v1600_v57 = vperm.slane %v1595_v11, 3 }
 0x15b   : > { %s4789_s23 = scalar_lea.vmem [#allocation12], %s4633_s2  ;;  %s2537_s11 = scalar_lea.hbm %s4845_s7, %s4069_s9 }
 0x15c   : > { %s2538_s12 = sshll.u32 %s4789_s23, 4  ;;  %s2540_s15 = sshll.u32 %s2537_s11, 4  ;;  %s2539_s12 = int_to_ptr.vmem [resolvable:$true] %s2538_s12  ;;  %s2541_s15 = int_to_ptr.hbm [resolvable:$true] %s2540_s15 }
 0x15d   : > { %s2503_s17 = scalar_lea.sflag [#allocation13], %s4630_s4  ;;  %s4370_s16 = sshra.s32 %s2541_s15, 4  ;;  %s4371_s16 = int_to_ptr.hbm [resolvable:$true] %s4370_s16 }
 0x15e   : > { %s4372_s27 = scalar_lea.hbm %s4371_s16, 32  ;;  %s4376_s19 = scalar_lea.hbm %s4845_s7, 64 }
 0x15f   : > { %p4373_p3 = scmp.ne.s32.totalorder %s4371_s16, %s4372_s27  ;;  %p4377_p2 = scmp.lt.s32.totalorder %s4371_s16, %s4845_s7 }
 0x160   : > { %v2274_v8 = vpop.f32.mrf.mxu0  ;;  %p4378_p1 = scmp.lt.s32.totalorder %s4376_s19, %s4372_s27 }
 0x161   : > { %v2288_v9 = vpop.f32.mrf.mxu1  ;;  %v2275_v14 = vadd.f32 %v2274_v8, %v1597_v3  ;;  %p4374_p7 = pnand %p4373_p3, %p4600_p5 }
 0x162   : > { %p4379_p4 = por %p4378_p1, %p4377_p2 }
 0x163   : > { %v2289_v18 = vadd.f32 %v2288_v9, %v2275_v14  ;;  %p4375_p9 = pneg %p4374_p7 }
 0x165   : > { %p4380_p8 = pnand %p4379_p4, %p4375_p9 }
 0x168   : > { %v2302_v27 = vpop.f32.mrf.mxu2  ;;  %v2276_v12 = vpop.f32.mrf.mxu0 }
 0x169   : > { %v2316_v45 = vpop.f32.mrf.mxu3  ;;  %v2290_v13 = vpop.f32.mrf.mxu1  ;;  %v2303_v31 = vadd.f32 %v2302_v27, %v2289_v18  ;;  %v2277_v32 = vadd.f32 %v2276_v12, %v1597_v3 }
 0x16b   : > { %v2317_v36 = vadd.f32 %v2316_v45, %v2303_v31  ;;  %v2291_v6 = vadd.f32 %v2290_v13, %v2277_v32 }
 0x170   : > { %v2304_v10 = vpop.f32.mrf.mxu2 }
 0x171   : > { %v2318_v15 = vpop.f32.mrf.mxu3  ;;  %v2305_v41 = vadd.f32 %v2304_v10, %v2291_v6 }
 0x173   : > { %v2319_v46 = vadd.f32 %v2318_v15, %v2305_v41 }
 0x180   : > { %v2330_v19 = vpop.f32.mrf.mxu0 }
 0x181   : > { %v2331_v21 = vadd.f32 %v2330_v19, %v1598_v16  ;;  %v2344_v24 = vpop.f32.mrf.mxu1 }
 0x183   : > { %v2345_v30 = vadd.f32 %v2344_v24, %v2331_v21 }
 0x188   : > { %v2358_v33 = vpop.f32.mrf.mxu2  ;;  %v2332_v38 = vpop.f32.mrf.mxu0 }
 0x189   : > { %v2359_v34 = vadd.f32 %v2358_v33, %v2345_v30  ;;  %v2372_v50 = vpop.f32.mrf.mxu3  ;;  %v2333_v23 = vadd.f32 %v2332_v38, %v1598_v16  ;;  %v2346_v39 = vpop.f32.mrf.mxu1 }
 0x18b   : > { %v2373_v37 = vadd.f32 %v2372_v50, %v2359_v34  ;;  %v2347_v40 = vadd.f32 %v2346_v39, %v2333_v23 }
 0x18d   : > { %v2489_v35 = vpack.c.bf16 %v2373_v37, %v2317_v36 }
 0x18f   : > { %2493 = vst [vmem:[%s4789_s23] sm:$0xff] %v2489_v35 }
 0x190   : > { %v2360_v42 = vpop.f32.mrf.mxu2 }
 0x191   : > { %v2361_v43 = vadd.f32 %v2360_v42, %v2347_v40  ;;  %v2374_v44 = vpop.f32.mrf.mxu3 }
 0x193   : > { %v2375_v47 = vadd.f32 %v2374_v44, %v2361_v43 }
 0x195   : > { %v2491_v48 = vpack.c.bf16 %v2375_v47, %v2319_v46 }
 0x197   : > { %2495 = vst [vmem:[%s4789_s23 + $0x10] sm:$0xff] %v2491_v48 }
 0x1a0   : > { %v2386_v49 = vpop.f32.mrf.mxu0 }
 0x1a1   : > { %v2400_v51 = vpop.f32.mrf.mxu1  ;;  %v2387_v25 = vadd.f32 %v2386_v49, %v1599_v54 }
 0x1a3   : > { %v2401_v60 = vadd.f32 %v2400_v51, %v2387_v25 }
 0x1a8   : > { %v2414_v20 = vpop.f32.mrf.mxu2  ;;  %v2388_v53 = vpop.f32.mrf.mxu0 }
 0x1a9   : > { %v2428_v52 = vpop.f32.mrf.mxu3  ;;  %v2402_v56 = vpop.f32.mrf.mxu1  ;;  %v2415_v62 = vadd.f32 %v2414_v20, %v2401_v60  ;;  %v2389_v55 = vadd.f32 %v2388_v53, %v1599_v54 }
 0x1ab   : > { %v2429_v2 = vadd.f32 %v2428_v52, %v2415_v62  ;;  %v2403_v4 = vadd.f32 %v2402_v56, %v2389_v55 }
 0x1b0   : > { %v2416_v28 = vpop.f32.mrf.mxu2 }
 0x1b1   : > { %v2430_v22 = vpop.f32.mrf.mxu3  ;;  %v2417_v9 = vadd.f32 %v2416_v28, %v2403_v4 }
 0x1b3   : > { %v2431_v13 = vadd.f32 %v2430_v22, %v2417_v9 }
 0x1c0   : > { %v2442_v58 = vpop.f32.mrf.mxu0 }
 0x1c1   : > { %v2443_v26 = vadd.f32 %v2442_v58, %v1600_v57  ;;  %v2456_v29 = vpop.f32.mrf.mxu1 }
 0x1c3   : > { %v2457_v61 = vadd.f32 %v2456_v29, %v2443_v26 }
 0x1c8   : > { %v2470_v63 = vpop.f32.mrf.mxu2  ;;  %v2444_v1 = vpop.f32.mrf.mxu0 }
 0x1c9   : > { %v2471_v0 = vadd.f32 %v2470_v63, %v2457_v61  ;;  %v2484_v59 = vpop.f32.mrf.mxu3  ;;  %v2445_v7 = vadd.f32 %v2444_v1, %v1600_v57  ;;  %v2458_v8 = vpop.f32.mrf.mxu1 }
 0x1cb   : > { %v2485_v5 = vadd.f32 %v2484_v59, %v2471_v0  ;;  %v2459_v27 = vadd.f32 %v2458_v8, %v2445_v7 }
 0x1cd   : > { %v2490_v17 = vpack.c.bf16 %v2485_v5, %v2429_v2 }
 0x1cf   : > { %2494 = vst [vmem:[%s4789_s23 + $0x8] sm:$0xff] %v2490_v17 }
 0x1d0   : > { %v2472_v45 = vpop.f32.mrf.mxu2 }
 0x1d1   : > { %v2473_v11 = vadd.f32 %v2472_v45, %v2459_v27  ;;  %v2486_v12 = vpop.f32.mrf.mxu3 }
 0x1d3   : > { %v2487_v3 = vadd.f32 %v2486_v12, %v2473_v11 }
 0x1d5   : > { %v2492_v10 = vpack.c.bf16 %v2487_v3, %v2431_v13 }
 0x1d7   : > { %2496 = vst [vmem:[%s4789_s23 + $0x18] sm:$0xff] %v2492_v10 }
 0x1d8   : > { %4383 = shalt.err (!%p4380_p8)
}
 0x1d9   : > { %4088 = dma.vmem_to_hbm [thread:$0]  (%p4600_p5), %s2539_s12, 512, %s2541_s15, %s2503_s17, %s4461_s28, %s4461_s28, %s4462_s10  }
 0x1da PF: > { %s2555_s3 = sand.u32 1, %s4434_s24   ;;  %p4109_p10 = pnand %p2724_p11, %p4548_p6 }
 0x1db   : > { %s2556_s13 = scalar_lea.sflag [#allocation4], %s2555_s3 }
 0x1dc   : > { %p4110_p12 = pneg %p4109_p10 }
 0x1de   : > { %4425 = dma.done.wait (%p4110_p12), %s2556_s13, 512  }
 0x1df   : > { %4427 = vsyncadd (%p4110_p12), %s2556_s13, 4294966784  ;;  %s2566_s14 = scalar_lea.sflag [#allocation13], %s2555_s3 }
 0x1e0   : > { %4429 = dma.done.wait (%p4110_p12), %s2566_s14, 512  }
 0x1e1   : > { %4431 = vsyncadd (%p4110_p12), %s2566_s14, 4294966784  ;;  %s31_s29 = sadd.s32 1, %s4454_s29   ;;  %s4872_s20 = sld [smem:[#allocation23_spill]] }
 0x1e2   : > { %p28_p13 = scmp.ge.s32.totalorder %s31_s29, 4   ;;  %s4873_s27 = sld [smem:[#allocation20_spill]] }
 0x1e3   : > { %s4874_s28 = sld [smem:[#allocation22_spill]]  ;;  %s4875_s24 = smov %s4438_s25 }
 0x1e4   : > { %s4876_s25 = smov %s4442_s26  ;;  %30 = sbr.rel (!%p28_p13) target bundleno = 15 (0xf), region = 131 }
 0x1e7   : > { %s4877_s26 = smov %s4872_s20 }
 0x1e9   :  { %2572 = vsyncpa [#allocation3], 1 }
 0x1ea   :  { %2574 = vsyncpa [#allocation3 + $0x1], 1 }
 0x1eb   :  { %2575 = vsyncpa [#allocation6], 1 }
 0x1ec   :  { %2577 = vsyncpa [#allocation6 + $0x1], 1 }
 0x1ed   :  { %2578 = vsyncpa [#allocation9], 1 }
 0x1ee   :  { %2579 = vsyncpa [#allocation4], 1 }
 0x1ef   :  { %2581 = vsyncpa [#allocation4 + $0x1], 1 }
 0x1f0   :  { %2582 = vsyncpa [#allocation13], 1 }
 0x1f1   :  { %2584 = vsyncpa [#allocation13 + $0x1], 1 }

</bundles_post_ra>
